<compile_context>
chip_gen: v7x
topology: tpu7x:2x2x1
jax: 0.10.0
libtpu: 0.0.40
codegen_flags: <defaults>
</compile_context>

<pallas_src>
import jax
import jax.numpy as jnp
from jax import lax
from jax.experimental import pallas as pl
from jax.experimental.pallas import tpu as pltpu

BN_EPS = 1e-5
D_FEAT = 1024      # fc in/out features == BatchNorm1d features
TILE_N = 512       # hidden-feature column tile
N_SPLIT = 2        # leading "parallel" axis (both TCs on v7x; sequential elsewhere)
N_INNER = D_FEAT // (TILE_N * N_SPLIT)   # inner "arbitrary" (reduction) steps


def only_voice_kernel(x_ref,                 # (B, 1024)        f32   (constant block)
                      g_ref, bt_ref,         # (1, 1024)        f32   BN gamma / beta
                      w_ref, b_ref,          # (1024, TILE_N) bf16, (1, TILE_N) f32
                      m_ref,                 # (B, TILE_N)      bf16  inverted dropout mask
                      wo_ref,                # (TILE_N, C)      bf16  fc_out weight rows
                      emb_ref,               # (B, TILE_N)      f32   embedding columns
                      part_ref,              # (1, B, C)        f32   per-core partial logits
                      xn_ref):               # VMEM scratch (B, 1024) bf16
    j = pl.program_id(1)

    # BatchNorm1d (training mode, biased batch statistics) -- hoisted: computed
    # once per core (j == 0) into a bf16 scratch reused by every column tile.
    @pl.when(j == 0)
    def _():
        xa = x_ref[...]
        mu = jnp.mean(xa, axis=0, keepdims=True)
        var = jnp.mean((xa - mu) ** 2, axis=0, keepdims=True)
        xn = (xa - mu) * lax.rsqrt(var + BN_EPS) * g_ref[...] + bt_ref[...]
        xn_ref[...] = xn.astype(jnp.bfloat16)

    # fc column tile: (B, 1024) @ (1024, TILE_N), bf16 operands, f32 accumulate.
    h = jnp.dot(xn_ref[...], w_ref[...],
                preferred_element_type=jnp.float32) + b_ref[...]
    h = h * m_ref[...].astype(jnp.float32)   # Dropout(0.5) via inverted mask
    h = jnp.maximum(h, 0.0)                  # ReLU
    emb_ref[...] = h

    # fc_out: partial logits for this column tile, accumulated directly into
    # the per-core output block (constant across the inner reduction axis).
    partial = jnp.dot(h.astype(jnp.bfloat16), wo_ref[...],
                      preferred_element_type=jnp.float32)

    @pl.when(j == 0)
    def _():
        part_ref[...] = jnp.zeros_like(part_ref)

    part_ref[...] += partial[None]


def only_voice_feature(x, params, dropout_mask):
    """x: (B, >=1024) f32.  Returns (embedding (B, 1024), output (B, nb_classes))."""
    B = x.shape[0]
    assert x.shape[1] >= D_FEAT
    nb_classes = params["nb_classes"]
    n_inner = N_INNER
    assert TILE_N * N_SPLIT * n_inner == D_FEAT

    def col(p, j):               # global hidden-column tile index
        return p * n_inner + j

    grid_spec = pltpu.PrefetchScalarGridSpec(
        num_scalar_prefetch=0,
        grid=(N_SPLIT, n_inner),
        in_specs=[
            pl.BlockSpec((B, D_FEAT), lambda p, j: (0, 0)),            # x[:, :1024]
            pl.BlockSpec((1, D_FEAT), lambda p, j: (0, 0)),            # gamma
            pl.BlockSpec((1, D_FEAT), lambda p, j: (0, 0)),            # beta
            pl.BlockSpec((D_FEAT, TILE_N), lambda p, j: (0, col(p, j))),    # fc W cols
            pl.BlockSpec((1, TILE_N), lambda p, j: (0, col(p, j))),         # fc bias
            pl.BlockSpec((B, TILE_N), lambda p, j: (0, col(p, j))),         # mask cols
            pl.BlockSpec((TILE_N, nb_classes), lambda p, j: (col(p, j), 0)),  # fc_out rows
        ],
        out_specs=(
            pl.BlockSpec((B, TILE_N), lambda p, j: (0, col(p, j))),         # embedding
            pl.BlockSpec((1, B, nb_classes), lambda p, j: (p, 0, 0)),       # partial logits
        ),
        scratch_shapes=[pltpu.VMEM((B, D_FEAT), jnp.bfloat16)],
    )

    emb, partials = pl.pallas_call(
        only_voice_kernel,
        out_shape=(jax.ShapeDtypeStruct((B, D_FEAT), jnp.float32),
                   jax.ShapeDtypeStruct((N_SPLIT, B, nb_classes), jnp.float32)),
        grid_spec=grid_spec,
        compiler_params=pltpu.CompilerParams(
            # leading axis: independent per-core partials -> "parallel"
            # inner axis: carries the fc_out reduction -> "arbitrary"
            dimension_semantics=("parallel", "arbitrary"),
            vmem_limit_bytes=32 * 1024 * 1024,
        ),
    )(x, params["gamma"], params["beta"],
      params["w"], params["b"], dropout_mask,
      params["w_out"])

    output = jnp.sum(partials, axis=0) + params["b_out"]
    return emb, output


def _linear_init(key, fan_in, fan_out):
    # PyTorch nn.Linear default init: U(-1/sqrt(fan_in), 1/sqrt(fan_in)).
    kw, kb = jax.random.split(key)
    bound = 1.0 / jnp.sqrt(fan_in)
    w = jax.random.uniform(kw, (fan_in, fan_out), jnp.float32, -bound, bound)
    b = jax.random.uniform(kb, (1, fan_out), jnp.float32, -bound, bound)
    return w, b


def make_params(key, nb_classes):
    k1, k2 = jax.random.split(key)
    w_f32, b = _linear_init(k1, D_FEAT, D_FEAT)
    wo_f32, bo = _linear_init(k2, D_FEAT, nb_classes)
    return {
        "w": w_f32.astype(jnp.bfloat16),        # bf16 weights fed to the kernel
        "b": b,
        "w_out": wo_f32.astype(jnp.bfloat16),   # unpadded (1024, nb_classes) bf16
        "b_out": bo,                            # added in the wrapper
        # BatchNorm1d defaults: weight=1, bias=0
        "gamma": jnp.ones((1, D_FEAT), jnp.float32),
        "beta": jnp.zeros((1, D_FEAT), jnp.float32),
        "nb_classes": nb_classes,
    }


def make_dropout_mask(key, batch, p=0.5):
    keep = 1.0 - p
    m = jax.random.bernoulli(key, keep, (batch, D_FEAT)).astype(jnp.float32) / keep
    return m.astype(jnp.bfloat16)               # {0, 2} exact in bf16


def reference(x, params, dropout_mask):
    """Pure-JAX reference of the same training-mode forward with the same bf16
    weight / activation quantization (f32 accumulation) as the kernel."""
    hi = lax.Precision.HIGHEST
    x_a = x[:, :D_FEAT]
    mu = jnp.mean(x_a, axis=0, keepdims=True)
    var = jnp.mean((x_a - mu) ** 2, axis=0, keepdims=True)
    xn = (x_a - mu) * lax.rsqrt(var + BN_EPS) * params["gamma"] + params["beta"]

    w = params["w"].astype(jnp.float32)
    h = jnp.dot(xn.astype(jnp.bfloat16).astype(jnp.float32), w, precision=hi) + params["b"]
    h = jnp.maximum(h * dropout_mask.astype(jnp.float32), 0.0)

    wo = params["w_out"].astype(jnp.float32)
    out = jnp.dot(h.astype(jnp.bfloat16).astype(jnp.float32), wo, precision=hi) \
        + params["b_out"]
    return h, out


if __name__ == "__main__":
    B = 8
    nb_classes = 10

    key = jax.random.PRNGKey(0)
    kx, kp, kd = jax.random.split(key, 3)
    # x wider than 1024: the kernel's BlockSpec performs the x[:, :1024] slice.
    x = jax.random.normal(kx, (B, D_FEAT + 256), jnp.float32)
    params = make_params(kp, nb_classes)
    dropout_mask = make_dropout_mask(kd, B)

    emb, out = only_voice_feature(x, params, dropout_mask)
    emb = jax.block_until_ready(emb)
    out = jax.block_until_ready(out)

    assert emb.shape == (B, D_FEAT) and out.shape == (B, nb_classes)
    assert bool(jnp.all(jnp.isfinite(emb))) and bool(jnp.all(jnp.isfinite(out)))

    emb_ref, out_ref = reference(x, params, dropout_mask)
    assert bool(jnp.allclose(emb, emb_ref, atol=2e-3, rtol=2e-3))
    assert bool(jnp.allclose(out, out_ref, atol=2e-3, rtol=2e-3))

    print("KERNEL_OK")
</pallas_src>

<mosaic_0001>
module attributes {stable_mosaic.version = 11 : i64} {
  func.func @only_voice_kernel(%arg0: i32, %arg1: i32, %arg2: memref<8x1024xf32, #tpu.memory_space<vmem>>, %arg3: memref<1x1024xf32, #tpu.memory_space<vmem>>, %arg4: memref<1x1024xf32, #tpu.memory_space<vmem>>, %arg5: memref<1024x512xbf16, #tpu.memory_space<vmem>>, %arg6: memref<1x512xf32, #tpu.memory_space<vmem>>, %arg7: memref<8x512xbf16, #tpu.memory_space<vmem>>, %arg8: memref<512x10xbf16, #tpu.memory_space<vmem>>, %arg9: memref<8x512xf32, #tpu.memory_space<vmem>>, %arg10: memref<1x8x10xf32, #tpu.memory_space<vmem>>, %arg11: memref<8x1024xbf16, #tpu.memory_space<vmem>>) attributes {dimension_semantics = [#tpu.dimension_semantics<parallel>, #tpu.dimension_semantics<arbitrary>], iteration_bounds = array<i64: 2, 1>, scalar_prefetch = 0 : i64, scratch_operands = 1 : i64, tpu.core_type = #tpu.core_type<tc>, window_params = [{transform_indices = @transform_0, window_bounds = array<i64: 8, 1024>}, {pipeline_mode = #tpu.pipeline_mode<synchronous>, transform_indices = @transform_1, window_bounds = array<i64: 1, 1024>}, {pipeline_mode = #tpu.pipeline_mode<synchronous>, transform_indices = @transform_2, window_bounds = array<i64: 1, 1024>}, {transform_indices = @transform_3, window_bounds = array<i64: 1024, 512>}, {transform_indices = @transform_4, window_bounds = array<i64: 1, 512>}, {transform_indices = @transform_5, window_bounds = array<i64: 8, 512>}, {transform_indices = @transform_6, window_bounds = array<i64: 512, 10>}, {transform_indices = @transform_7, window_bounds = array<i64: 8, 512>}, {transform_indices = @transform_8, window_bounds = array<i64: 1, 8, 10>}]} {
    %c0_i32 = arith.constant 0 : i32
    %0 = arith.cmpi eq, %arg1, %c0_i32 : i32
    %1 = arith.extui %0 : i1 to i32
    %c0_i32_0 = arith.constant 0 : i32
    %2 = arith.cmpi ne, %1, %c0_i32_0 : i32
    scf.if %2 {
      %c0_22 = arith.constant 0 : index
      %c0_23 = arith.constant 0 : index
      %25 = vector.load %arg2[%c0_22, %c0_23] : memref<8x1024xf32, #tpu.memory_space<vmem>>, vector<8x1024xf32>
      %cst_24 = arith.constant dense<0.000000e+00> : vector<1024xf32>
      %26 = vector.multi_reduction <add>, %25, %cst_24 [0] : vector<8x1024xf32> to vector<1024xf32>
      %27 = vector.shape_cast %26 : vector<1024xf32> to vector<1x1024xf32>
      %cst_25 = arith.constant 8.000000e+00 : f32
      %28 = vector.broadcast %cst_25 : f32 to vector<1x1024xf32>
      %29 = arith.divf %27, %28 : vector<1x1024xf32>
      %30 = vector.broadcast %29 : vector<1x1024xf32> to vector<8x1024xf32>
      %31 = arith.subf %25, %30 : vector<8x1024xf32>
      %32 = arith.mulf %31, %31 : vector<8x1024xf32>
      %cst_26 = arith.constant dense<0.000000e+00> : vector<1024xf32>
      %33 = vector.multi_reduction <add>, %32, %cst_26 [0] : vector<8x1024xf32> to vector<1024xf32>
      %34 = vector.shape_cast %33 : vector<1024xf32> to vector<1x1024xf32>
      %cst_27 = arith.constant 8.000000e+00 : f32
      %35 = vector.broadcast %cst_27 : f32 to vector<1x1024xf32>
      %36 = arith.divf %34, %35 : vector<1x1024xf32>
      %37 = vector.broadcast %29 : vector<1x1024xf32> to vector<8x1024xf32>
      %38 = arith.subf %25, %37 : vector<8x1024xf32>
      %cst_28 = arith.constant 9.99999974E-6 : f32
      %39 = vector.broadcast %cst_28 : f32 to vector<1x1024xf32>
      %40 = arith.addf %36, %39 : vector<1x1024xf32>
      %41 = math.rsqrt %40 : vector<1x1024xf32>
      %42 = vector.broadcast %41 : vector<1x1024xf32> to vector<8x1024xf32>
      %43 = arith.mulf %38, %42 : vector<8x1024xf32>
      %c0_29 = arith.constant 0 : index
      %c0_30 = arith.constant 0 : index
      %44 = vector.load %arg3[%c0_29, %c0_30] : memref<1x1024xf32, #tpu.memory_space<vmem>>, vector<1x1024xf32>
      %45 = vector.broadcast %44 : vector<1x1024xf32> to vector<8x1024xf32>
      %46 = arith.mulf %43, %45 : vector<8x1024xf32>
      %c0_31 = arith.constant 0 : index
      %c0_32 = arith.constant 0 : index
      %47 = vector.load %arg4[%c0_31, %c0_32] : memref<1x1024xf32, #tpu.memory_space<vmem>>, vector<1x1024xf32>
      %48 = vector.broadcast %47 : vector<1x1024xf32> to vector<8x1024xf32>
      %49 = arith.addf %46, %48 : vector<8x1024xf32>
      %50 = arith.truncf %49 : vector<8x1024xf32> to vector<8x1024xbf16>
      %c0_33 = arith.constant 0 : index
      %c0_34 = arith.constant 0 : index
      %51 = vector.load %arg11[%c0_33, %c0_34] : memref<8x1024xbf16, #tpu.memory_space<vmem>>, vector<8x1024xbf16>
      tpu.vector_store %arg11[%c0_33, %c0_34], %50 {strides = array<i32>} : memref<8x1024xbf16, #tpu.memory_space<vmem>>, vector<8x1024xbf16>,
    } else {
    }
    %c0 = arith.constant 0 : index
    %c0_1 = arith.constant 0 : index
    %3 = vector.load %arg11[%c0, %c0_1] : memref<8x1024xbf16, #tpu.memory_space<vmem>>, vector<8x1024xbf16>
    %c0_2 = arith.constant 0 : index
    %c0_3 = arith.constant 0 : index
    %4 = vector.load %arg5[%c0_2, %c0_3] : memref<1024x512xbf16, #tpu.memory_space<vmem>>, vector<1024x512xbf16>
    %cst = arith.constant dense<0.000000e+00> : vector<8x512xf32>
    %5 = tpu.matmul %3, %4, %cst {dimension_numbers = #tpu.dot_dimension_numbers<[1], [0], [0], [1], [0, 0, 1, 1], [], []>} : vector<8x1024xbf16>, vector<1024x512xbf16>, vector<8x512xf32> -> vector<8x512xf32>
    %c0_4 = arith.constant 0 : index
    %c0_5 = arith.constant 0 : index
    %6 = vector.load %arg6[%c0_4, %c0_5] : memref<1x512xf32, #tpu.memory_space<vmem>>, vector<1x512xf32>
    %7 = vector.broadcast %6 : vector<1x512xf32> to vector<8x512xf32>
    %8 = arith.addf %5, %7 : vector<8x512xf32>
    %c0_6 = arith.constant 0 : index
    %c0_7 = arith.constant 0 : index
    %9 = vector.load %arg7[%c0_6, %c0_7] : memref<8x512xbf16, #tpu.memory_space<vmem>>, vector<8x512xbf16>
    %10 = arith.extf %9 : vector<8x512xbf16> to vector<8x512xf32>
    %11 = arith.mulf %8, %10 : vector<8x512xf32>
    %cst_8 = arith.constant 0.000000e+00 : f32
    %12 = vector.broadcast %cst_8 : f32 to vector<8x512xf32>
    %13 = arith.maximumf %11, %12 : vector<8x512xf32>
    %c0_9 = arith.constant 0 : index
    %c0_10 = arith.constant 0 : index
    %14 = vector.load %arg9[%c0_9, %c0_10] : memref<8x512xf32, #tpu.memory_space<vmem>>, vector<8x512xf32>
    tpu.vector_store %arg9[%c0_9, %c0_10], %13 {strides = array<i32>} : memref<8x512xf32, #tpu.memory_space<vmem>>, vector<8x512xf32>,
    %15 = arith.truncf %13 : vector<8x512xf32> to vector<8x512xbf16>
    %c0_11 = arith.constant 0 : index
    %c0_12 = arith.constant 0 : index
    %16 = vector.load %arg8[%c0_11, %c0_12] : memref<512x10xbf16, #tpu.memory_space<vmem>>, vector<512x10xbf16>
    %cst_13 = arith.constant dense<0.000000e+00> : vector<8x10xf32>
    %17 = tpu.matmul %15, %16, %cst_13 {dimension_numbers = #tpu.dot_dimension_numbers<[1], [0], [0], [1], [0, 0, 1, 1], [], []>} : vector<8x512xbf16>, vector<512x10xbf16>, vector<8x10xf32> -> vector<8x10xf32>
    %c0_i32_14 = arith.constant 0 : i32
    %18 = arith.cmpi eq, %arg1, %c0_i32_14 : i32
    %19 = arith.extui %18 : i1 to i32
    %c0_i32_15 = arith.constant 0 : i32
    %20 = arith.cmpi ne, %19, %c0_i32_15 : i32
    scf.if %20 {
      %cst_22 = arith.constant 0.000000e+00 : f32
      %25 = vector.broadcast %cst_22 : f32 to vector<1x8x10xf32>
      %c0_23 = arith.constant 0 : index
      %c0_24 = arith.constant 0 : index
      %c0_25 = arith.constant 0 : index
      %26 = vector.load %arg10[%c0_23, %c0_24, %c0_25] : memref<1x8x10xf32, #tpu.memory_space<vmem>>, vector<1x8x10xf32>
      tpu.vector_store %arg10[%c0_23, %c0_24, %c0_25], %25 {strides = array<i32>} : memref<1x8x10xf32, #tpu.memory_space<vmem>>, vector<1x8x10xf32>,
    } else {
    }
    %c0_16 = arith.constant 0 : index
    %c0_17 = arith.constant 0 : index
    %c0_18 = arith.constant 0 : index
    %21 = vector.load %arg10[%c0_16, %c0_17, %c0_18] : memref<1x8x10xf32, #tpu.memory_space<vmem>>, vector<1x8x10xf32>
    %22 = vector.shape_cast %17 : vector<8x10xf32> to vector<1x8x10xf32>
    %23 = arith.addf %21, %22 : vector<1x8x10xf32>
    %c0_19 = arith.constant 0 : index
    %c0_20 = arith.constant 0 : index
    %c0_21 = arith.constant 0 : index
    %24 = vector.load %arg10[%c0_19, %c0_20, %c0_21] : memref<1x8x10xf32, #tpu.memory_space<vmem>>, vector<1x8x10xf32>
    tpu.vector_store %arg10[%c0_19, %c0_20, %c0_21], %23 {strides = array<i32>} : memref<1x8x10xf32, #tpu.memory_space<vmem>>, vector<1x8x10xf32>,
    return
  }
  func.func @transform_0(%arg0: i32, %arg1: i32) -> (i32, i32) {
    %c0_i32 = arith.constant 0 : i32
    %c0_i32_0 = arith.constant 0 : i32
    %c0_i32_1 = arith.constant 0 : i32
    return %c0_i32, %c0_i32_0 : i32, i32
  }
  func.func @transform_1(%arg0: i32, %arg1: i32) -> (i32, i32) {
    %c0_i32 = arith.constant 0 : i32
    %c0_i32_0 = arith.constant 0 : i32
    %c0_i32_1 = arith.constant 0 : i32
    return %c0_i32, %c0_i32_0 : i32, i32
  }
  func.func @transform_2(%arg0: i32, %arg1: i32) -> (i32, i32) {
    %c0_i32 = arith.constant 0 : i32
    %c0_i32_0 = arith.constant 0 : i32
    %c0_i32_1 = arith.constant 0 : i32
    return %c0_i32, %c0_i32_0 : i32, i32
  }
  func.func @transform_3(%arg0: i32, %arg1: i32) -> (i32, i32) {
    %c1_i32 = arith.constant 1 : i32
    %0 = arith.muli %arg0, %c1_i32 : i32
    %1 = arith.addi %0, %arg1 : i32
    %c0_i32 = arith.constant 0 : i32
    %c0_i32_0 = arith.constant 0 : i32
    return %c0_i32, %1 : i32, i32
  }
  func.func @transform_4(%arg0: i32, %arg1: i32) -> (i32, i32) {
    %c1_i32 = arith.constant 1 : i32
    %0 = arith.muli %arg0, %c1_i32 : i32
    %1 = arith.addi %0, %arg1 : i32
    %c0_i32 = arith.constant 0 : i32
    %c0_i32_0 = arith.constant 0 : i32
    return %c0_i32, %1 : i32, i32
  }
  func.func @transform_5(%arg0: i32, %arg1: i32) -> (i32, i32) {
    %c1_i32 = arith.constant 1 : i32
    %0 = arith.muli %arg0, %c1_i32 : i32
    %1 = arith.addi %0, %arg1 : i32
    %c0_i32 = arith.constant 0 : i32
    %c0_i32_0 = arith.constant 0 : i32
    return %c0_i32, %1 : i32, i32
  }
  func.func @transform_6(%arg0: i32, %arg1: i32) -> (i32, i32) {
    %c1_i32 = arith.constant 1 : i32
    %0 = arith.muli %arg0, %c1_i32 : i32
    %1 = arith.addi %0, %arg1 : i32
    %c0_i32 = arith.constant 0 : i32
    %c0_i32_0 = arith.constant 0 : i32
    return %1, %c0_i32 : i32, i32
  }
  func.func @transform_7(%arg0: i32, %arg1: i32) -> (i32, i32) {
    %c1_i32 = arith.constant 1 : i32
    %0 = arith.muli %arg0, %c1_i32 : i32
    %1 = arith.addi %0, %arg1 : i32
    %c0_i32 = arith.constant 0 : i32
    %c0_i32_0 = arith.constant 0 : i32
    return %c0_i32, %1 : i32, i32
  }
  func.func @transform_8(%arg0: i32, %arg1: i32) -> (i32, i32, i32) {
    %c0_i32 = arith.constant 0 : i32
    %c0_i32_0 = arith.constant 0 : i32
    %c0_i32_1 = arith.constant 0 : i32
    return %arg0, %c0_i32, %c0_i32_0 : i32, i32, i32
  }
}

</mosaic_0001>

<bundles_post_ra>
// kernel: tpu_custom_call.1
= control target key start
LH: loop header
LB: loop body
LE: loop exit
PB: predicated region body
PF: predicated region fallthrough
CT: control target
= control target key end

     0   :  { %s5423_s0 = inlined_call_operand.hbm [shape: f32[8,1280], index: 0, kind: input, shape index: {}]   ;;  %s5424_s1 = inlined_call_operand.hbm [shape: f32[1,1024], index: 1, kind: input, shape index: {}]   ;;  %s5425_s2 = inlined_call_operand.hbm [shape: f32[1,1024], index: 2, kind: input, shape index: {}]   ;;  %s5426_s3 = inlined_call_operand.hbm [shape: bf16[1024,1024], index: 3, kind: input, shape index: {}]   ;;  %s5427_s4 = inlined_call_operand.hbm [shape: f32[1,1024], index: 4, kind: input, shape index: {}]   ;;  %s5428_s5 = inlined_call_operand.hbm [shape: bf16[8,1024], index: 5, kind: input, shape index: {}]   ;;  %s5429_s6 = inlined_call_operand.vmem [shape: bf16[1024,10], index: 6, kind: input, shape index: {}]   ;;  %s5430_s7 = inlined_call_operand.hbm [shape: f32[8,1024], index: 7, kind: output, shape index: {0}]   ;;  %s5431_s8 = inlined_call_operand.hbm [shape: f32[2,8,10], index: 8, kind: output, shape index: {1}]  }
   0x1   :  { %5456 = sst [smem:[#allocation31_spill]] %s5424_s1 }
   0x2   :  { %5457 = sst [smem:[#allocation32_spill]] %s5426_s3 }
   0x3   :  { %5458 = sst [smem:[#allocation33_spill]] %s5429_s6 }
   0x4   :  { %5459 = sst [smem:[#allocation34_spill]] %s5430_s7 }
   0x5   :  { %5460 = sst [smem:[#allocation35_spill]] %s5431_s8 }
   0x6   :  { %14 = vsyncpa [#allocation4], 0 }
   0x7   :  { %15 = vsyncpa [#allocation7], 0 }
   0x8   :  { %16 = vsyncpa [#allocation10], 0 }
   0x9   :  { %18 = vsyncpa [#allocation10 + $0x1], 0 }
   0xa   :  { %19 = vsyncpa [#allocation13], 0 }
   0xb   :  { %21 = vsyncpa [#allocation13 + $0x1], 0 }
   0xc   :  { %22 = vsyncpa [#allocation5], 0 }
   0xd   :  { %24 = vsyncpa [#allocation5 + $0x1], 0 }
   0xe   :  { %25 = vsyncpa [#allocation16], 0 }
   0xf   :  { %27 = vsyncpa [#allocation16 + $0x1], 0  ;;  %s4654_s27 = smov 0   ;;  %s4656_s28 = smov 0  }
  0x10   :  { %s4658_s29 = smov 0   ;;  %s4660_s30 = smov 0  }
  0x11   :  { %s4662_s9 = smov 0   ;;  %s4664_s10 = smov 0  }
  0x12 LB: > { %5461 = sst [smem:[#allocation23_spill]] %s4575_s27  ;;  %s4685_s11 = sadd.s32 4294967295, %s4595_s10   ;;  %s4595_s10 = sphi %s4664_s10, %s33_s10   ;;  %s4591_s9 = sphi %s4662_s9, %s5514_s9   ;;  %s4587_s30 = sphi %s4660_s30, %s5513_s30   ;;  %s4583_s29 = sphi %s4658_s29, %s5509_s29   ;;  %s4579_s28 = sphi %s4656_s28, %s5512_s28   ;;  %s4575_s27 = sphi %s4654_s27, %s5511_s27  }
  0x13   : > { %5462 = sst [smem:[#allocation24_spill]] %s4583_s29  ;;  %s3328_s12 = sadd.s32 4294967294, %s4595_s10  }
  0x14   : > { %5463 = sst [smem:[#allocation25_spill]] %s4587_s30  ;;  %p124_p0 = scmp.ne.s32.totalorder %s4583_s29, %s4579_s28 }
  0x15   : > { %5464 = sst [smem:[#allocation26_spill]] %s4595_s10  ;;  %p125_p1 = scmp.eq.s32.totalorder %s4595_s10, 0 }
  0x16   : > { %p130_p2 = scmp.ne.s32.totalorder %s4579_s28, %s4575_s27  ;;  %p5435_p3 = scmp.eq.s32.totalorder %s4685_s11, 0 }
  0x17   : > { %p240_p4 = scmp.eq.s32.totalorder %s4685_s11, 1  ;;  %p4696_p5 = por %p125_p1, %p124_p0 }
  0x18   : > { %p246_p6 = scmp.eq.s32.totalorder %s3328_s12, 1  ;;  %p4702_p7 = por %p5435_p3, %p130_p2 }
  0x19   : > { %p4706_p8 = por %p240_p4, %p124_p0  ;;  %p3329_p10 = scmp.ge.s32.totalorder %s4595_s10, 1 }
  0x1a   : > { %s5466_s15 = scalar_select %p4702_p7, 1, 0 }
  0x1b   : > { %s5467_s16 = scalar_select %p4706_p8, 1, 0 }
  0x1c   : > { %p4710_p9 = por %p246_p6, %p130_p2  ;;  %p279_p11 = scmp.lt.s32.totalorder %s4595_s10, 3 }
  0x1d   : > { %5468 = sst [smem:[#allocation27_spill]] %s5467_s16  ;;  %s4597_s19 = smov [#allocation6]  }
  0x1e   : > { %s5469_s17 = scalar_select %p4710_p9, 1, 0 }
  0x1f   : > { %p4717_p13 = pnand %p3329_p10, %p279_p11  ;;  %s303_s20 = sshll.u32 %s4597_s19, 4  ;;  %s304_s20 = int_to_ptr.vmem [resolvable:$true] %s303_s20 }
  0x20   : > { %5470 = sst [smem:[#allocation28_spill]] %s5469_s17  ;;  %p3801_p1 = scmp.lt.s32.totalorder %s4595_s10, 2 }
  0x21   : > { %s5471_s18 = scalar_select %p4717_p13, 1, 0 }
  0x22   : > { %p3771_p0 = pneg %p4717_p13  ;;  %p4726_p4 = pnand %p3801_p1, %p4696_p5 }
  0x23   : > { %s45_s23 = sadd.s32 1, %s4591_s9  ;;  %s5475_s1 = sld [smem:[#allocation31_spill]] }
  0x24   : > { %s5472_s21 = scalar_select %p4726_p4, 1, 0 }
  0x25   : > { %p4732_p2 = pnand %p3771_p0, %p5435_p3  ;;  %p4737_p6 = scmp.ge.s32.totalorder %s45_s23, 2 }
  0x27   : > { %s5473_s22 = scalar_select %p4732_p2, 1, 0 }
  0x28   : > { %s5474_s24 = scalar_select %p4737_p6, 1, 0 }
  0x29   : > { %s4295_s14 = scalar_lea.hbm %s5475_s1, 128  ;;  %p4750_p10 = pneg %p4732_p2 }
  0x2a   : > { %p4296_p5 = scmp.ne.s32.totalorder %s5475_s1, %s4295_s14  ;;  %p4302_p0 = scmp.lt.u32.totalorder %s4295_s14, %s5475_s1 }
  0x2b   : > { %s5476_s17 = scalar_select %p4750_p10, 1, 0 }
  0x2c   : > { %p4298_p11 = pnand %p4750_p10, %p4296_p5 }
  0x2e   : > { %p4299_p1 = pneg %p4298_p11 }
  0x30   : > { %p4304_p12 = pnand %p4302_p0, %p4299_p1 }
  0x32   : > { %4307 = shalt.err (!%p4304_p12)
}
  0x33   : > { %s4308_s26 = scalar_lea.vmem %s304_s20, 128  ;;  %p4316_p7 = scmp.lt.s32.totalorder %s304_s20, %s304_s20 }
  0x34   : > { %p4309_p3 = scmp.ne.s32.totalorder %s304_s20, %s4308_s26  ;;  %p4317_p13 = scmp.lt.s32.totalorder %s4308_s26, %s4308_s26 }
  0x36   : > { %p4311_p9 = pnand %p4309_p3, %p4750_p10  ;;  %p4318_p4 = por %p4317_p13, %p4316_p7 }
  0x38   : > { %p4312_p8 = pneg %p4311_p9 }
  0x3a   : > { %p4319_p6 = pnand %p4318_p4, %p4312_p8 }
  0x3c   : > { %4322 = shalt.err (!%p4319_p6)
}
  0x3d   : > { %3777 = dma.hbm_to_vmem [thread:$0]  (!%p4732_p2), %s5475_s1, 128, %s304_s20, [#allocation7]  }
  0x3e   : > { %p5477_p3 = scmp.ne.s32.totalorder %s5474_s24, 0  ;;  %s4771_s8 = sand.u32 1, %s4583_s29  }
  0x3f   : > { %s3334_s14 = sshll.u32 %s4771_s8, 11  ;;  %s5443_s19 = sshll.u32 %s4591_s9, 8 }
  0x40   : > { %s5516_s23 = smov (%p5477_p3, %s45_s23), 0  ;;  %s329_s26 = scalar_lea.vmem [#allocation9], %s3334_s14 }
  0x41   : > { %5478 = sst [smem:[#allocation29_spill]] %s5516_s23  ;;  %s114_s27 = ssub.s32 %s4591_s9, %s5516_s23 }
  0x42   : > { %p115_p7 = scmp.eq.s32.totalorder %s114_s27, 0  ;;  %s337_s13 = sshll.u32 %s329_s26, 4  ;;  %s4789_s13 = int_to_ptr.vmem [resolvable:$true] %s337_s13 }
  0x43   : > { %s5479_s12 = sadd.s32 1, %s4583_s29  ;;  %s5481_s3 = sld [smem:[#allocation32_spill]] }
  0x44   : > { %s4780_s25 = scalar_select %p115_p7, %s4583_s29, %s5479_s12  }
  0x45   : > { %s5482_s24 = sand.u32 1, %s4595_s10   ;;  %p5483_p9 = scmp.ne.s32.totalorder %s5472_s21, 0 }
  0x46   : > { %5480 = sst [smem:[#allocation30_spill]] %s4780_s25  ;;  %s4793_s27 = scalar_lea.sflag [#allocation10], %s5482_s24 }
  0x47   : > { %p4799_p12 = pneg %p5483_p9 }
  0x49   : > { %s4787_s20 = scalar_lea.hbm %s5481_s3, %s5443_s19  ;;  %s4328_s12 = scalar_lea.hbm %s5481_s3, 65536 }
  0x4a   : > { %s4323_s14 = scalar_lea.hbm %s4787_s20, 32768  ;;  %p4329_p6 = scmp.lt.u32.totalorder %s4787_s20, %s5481_s3 }
  0x4b   : > { %p4324_p8 = scmp.ne.s32.totalorder %s4787_s20, %s4323_s14  ;;  %p4330_p5 = scmp.lt.u32.totalorder %s4328_s12, %s4323_s14 }
  0x4c   : > { %s5484_s26 = scalar_select %p4799_p12, 1, 0 }
  0x4d   : > { %p4326_p13 = pnand %p4799_p12, %p4324_p8  ;;  %p4331_p11 = por %p4330_p5, %p4329_p6 }
  0x4e   : > { %p4332_p1 = scmp.lt.u32.totalorder %s4323_s14, %s4787_s20 }
  0x4f   : > { %p4327_p4 = pneg %p4326_p13 }
  0x50   : > { %p4333_p0 = por %p4332_p1, %p4331_p11 }
  0x52   : > { %p4334_p3 = pnand %p4333_p0, %p4327_p4 }
  0x54   : > { %4337 = shalt.err (!%p4334_p3)
}
  0x55   : > { %s4338_s24 = scalar_lea.vmem %s4789_s13, 32768  ;;  %s4598_s7 = smov [#allocation9]  }
  0x56   : > { %p4339_p7 = scmp.ne.s32.totalorder %s4789_s13, %s4338_s24  ;;  %s4343_s16 = sshll.u32 %s4598_s7, 4  ;;  %s4344_s16 = int_to_ptr.vmem [resolvable:$false] %s4343_s16 }
  0x57   : > { %s4345_s1 = scalar_lea.vmem %s4344_s16, 65536  ;;  %p4346_p2 = scmp.lt.s32.totalorder %s4789_s13, %s4344_s16 }
  0x58   : > { %p4341_p8 = pnand %p4339_p7, %p4799_p12  ;;  %p4347_p10 = scmp.lt.s32.totalorder %s4345_s1, %s4338_s24 }
  0x5a   : > { %p4342_p13 = pneg %p4341_p8  ;;  %p4348_p6 = por %p4347_p10, %p4346_p2 }
  0x5c   : > { %p4349_p5 = pnand %p4348_p6, %p4342_p13 }
  0x5e   : > { %4352 = shalt.err (!%p4349_p5)
}
  0x5f   : > { %s4599_s19 = smov 512   ;;  %s4600_s14 = smov 256  }
  0x60   : > { %s4601_s12 = smov 16   ;;  %s4602_s3 = smov [#allocation3]  }
  0x61   : > { %3784 = dma.hbm_to_vmem [thread:$0]  (!%p5483_p9), %s4787_s20, 32768, %s4789_s13, %s4793_s27, %s4599_s19, %s4600_s14, %s4601_s12  }
  0x62   : > { %s292_s23 = sshll.u32 %s4602_s3, 4  ;;  %s4603_s7 = smov [#allocation8]   ;;  %s293_s23 = int_to_ptr.vmem [resolvable:$true] %s292_s23 }
  0x63   : > { %s314_s25 = sshll.u32 %s4603_s7, 4  ;;  %s4353_s1 = scalar_lea.hbm %s5423_s0, 1024  ;;  %s315_s25 = int_to_ptr.vmem [resolvable:$true] %s314_s25 }
  0x64   : > { %p4354_p2 = scmp.ne.s32.totalorder %s5423_s0, %s4353_s1  ;;  %p5485_p10 = scmp.ne.s32.totalorder %s5476_s17, 0 }
  0x65   : > { %s4358_s13 = scalar_lea.hbm %s5423_s0, 1280  ;;  %p4360_p0 = scmp.lt.u32.totalorder %s4353_s1, %s5423_s0 }
  0x66   : > { %p4356_p4 = pnand %p4354_p2, %p5485_p10  ;;  %p4359_p1 = scmp.lt.u32.totalorder %s4358_s13, %s4353_s1 }
  0x68   : > { %p4357_p11 = pneg %p4356_p4  ;;  %p4361_p3 = por %p4360_p0, %p4359_p1 }
  0x6a   : > { %p4362_p7 = pnand %p4361_p3, %p4357_p11 }
  0x6c   : > { %4365 = shalt.err (!%p4362_p7)
}
  0x6d   : > { %s4366_s19 = scalar_lea.vmem %s293_s23, 1024  ;;  %p4374_p5 = scmp.lt.s32.totalorder %s293_s23, %s293_s23 }
  0x6e   : > { %p4367_p8 = scmp.ne.s32.totalorder %s293_s23, %s4366_s19  ;;  %p4375_p2 = scmp.lt.s32.totalorder %s4366_s19, %s4366_s19 }
  0x70   : > { %p4369_p13 = pnand %p4367_p8, %p5485_p10  ;;  %p4376_p4 = por %p4375_p2, %p4374_p5 }
  0x72   : > { %p4370_p6 = pneg %p4369_p13 }
  0x74   : > { %p4377_p9 = pnand %p4376_p4, %p4370_p6 }
  0x76   : > { %4380 = shalt.err (!%p4377_p9)
}
  0x77   : > { %p5486_p12 = scmp.ne.s32.totalorder %s5473_s22, 0  ;;  %s3337_s30 = sshll.u32 %s4771_s8, 2 }
  0x78   : > { %s4381_s12 = scalar_lea.hbm %s5425_s2, 128 }
  0x79   : > { %3774 = dma.hbm_to_vmem [thread:$0]  (!%p5486_p12), %s5423_s0, 1024, %s293_s23, [#allocation4]  }
  0x7a   : > { %p4382_p11 = scmp.ne.s32.totalorder %s5425_s2, %s4381_s12  ;;  %p4388_p0 = scmp.lt.u32.totalorder %s4381_s12, %s5425_s2 }
  0x7c   : > { %p4384_p9 = pnand %p4382_p11, %p5485_p10 }
  0x7e   : > { %p4385_p1 = pneg %p4384_p9 }
  0x80   : > { %p4390_p3 = pnand %p4388_p0, %p4385_p1 }
  0x82   : > { %4393 = shalt.err (!%p4390_p3)
}
  0x83   : > { %s4394_s23 = scalar_lea.vmem %s315_s25, 128  ;;  %p4402_p6 = scmp.lt.s32.totalorder %s315_s25, %s315_s25 }
  0x84   : > { %p4395_p7 = scmp.ne.s32.totalorder %s315_s25, %s4394_s23  ;;  %p4403_p5 = scmp.lt.s32.totalorder %s4394_s23, %s4394_s23 }
  0x86   : > { %p4397_p8 = pnand %p4395_p7, %p5485_p10  ;;  %p4404_p2 = por %p4403_p5, %p4402_p6 }
  0x88   : > { %p4398_p13 = pneg %p4397_p8 }
  0x8a   : > { %p4405_p4 = pnand %p4404_p2, %p4398_p13 }
  0x8c   : > { %4408 = shalt.err (!%p4405_p4)
}
  0x8d   : > { %3780 = dma.hbm_to_vmem [thread:$0]  (!%p5486_p12), %s5425_s2, 128, %s315_s25, [#allocation7]  }
  0x8e   : > { %s3662_s20 = sshll.u32 %s4591_s9, 6  ;;  %s351_s29 = scalar_lea.vmem [#allocation11], %s3337_s30 }
  0x8f   : > { %s4867_s17 = scalar_lea.hbm %s5427_s4, %s3662_s20  ;;  %s360_s10 = sshll.u32 %s351_s29, 4  ;;  %s361_s10 = int_to_ptr.vmem [resolvable:$true] %s360_s10 }
  0x90   : > { %s4409_s22 = scalar_lea.hbm %s4867_s17, 64  ;;  %p5487_p11 = scmp.ne.s32.totalorder %s5484_s26, 0 }
  0x91   : > { %p4410_p10 = scmp.ne.s32.totalorder %s4867_s17, %s4409_s22  ;;  %s4414_s12 = scalar_lea.hbm %s5427_s4, 128 }
  0x92   : > { %p4415_p12 = scmp.lt.u32.totalorder %s4867_s17, %s5427_s4  ;;  %p4416_p0 = scmp.lt.u32.totalorder %s4414_s12, %s4409_s22 }
  0x93   : > { %p4412_p9 = pnand %p4410_p10, %p5487_p11  ;;  %p4418_p7 = scmp.lt.u32.totalorder %s4409_s22, %s4867_s17 }
  0x94   : > { %p4417_p3 = por %p4416_p0, %p4415_p12 }
  0x95   : > { %p4413_p1 = pneg %p4412_p9 }
  0x96   : > { %p4419_p8 = por %p4418_p7, %p4417_p3 }
  0x98   : > { %p4420_p13 = pnand %p4419_p8, %p4413_p1 }
  0x9a   : > { %4423 = shalt.err (!%p4420_p13)
}
  0x9b   : > { %s4424_s30 = scalar_lea.vmem %s361_s10, 64  ;;  %s4604_s24 = smov [#allocation11]  }
  0x9c   : > { %p4425_p6 = scmp.ne.s32.totalorder %s361_s10, %s4424_s30  ;;  %s4429_s1 = sshll.u32 %s4604_s24, 4  ;;  %s4430_s1 = int_to_ptr.vmem [resolvable:$false] %s4429_s1 }
  0x9d   : > { %s4431_s23 = scalar_lea.vmem %s4430_s1, 128  ;;  %p4432_p4 = scmp.lt.s32.totalorder %s361_s10, %s4430_s1 }
  0x9e   : > { %p4427_p5 = pnand %p4425_p6, %p5487_p11  ;;  %p4433_p10 = scmp.lt.s32.totalorder %s4431_s23, %s4424_s30 }
  0xa0   : > { %p4428_p2 = pneg %p4427_p5  ;;  %p4434_p9 = por %p4433_p10, %p4432_p4 }
  0xa2   : > { %p4435_p0 = pnand %p4434_p9, %p4428_p2 }
  0xa4   : > { %4438 = shalt.err (!%p4435_p0)
}
  0xa5   : > { %p5488_p12 = scmp.ne.s32.totalorder %s5472_s21, 0  ;;  %s3340_s13 = sshll.u32 %s4771_s8, 4 }
  0xa6   : > { %s5489_s3 = sshll.u32 %s4591_s9, 8  ;;  %s371_s29 = scalar_lea.vmem [#allocation12], %s3340_s13 }
  0xa7   : > { %3787 = dma.hbm_to_vmem [thread:$0]  (!%p5488_p12), %s4867_s17, 64, %s361_s10, %s4793_s27  }
  0xa8   : > { %s4893_s6 = scalar_lea.hbm %s5428_s5, %s5489_s3  ;;  %s380_s22 = sshll.u32 %s371_s29, 4  ;;  %s381_s22 = int_to_ptr.vmem [resolvable:$true] %s380_s22 }
  0xa9   : > { %s368_s14 = scalar_lea.sflag [#allocation13], %s4771_s8  ;;  %s4439_s25 = scalar_lea.hbm %s4893_s6, 256 }
  0xaa   : > { %p4440_p1 = scmp.ne.s32.totalorder %s4893_s6, %s4439_s25  ;;  %s4444_s10 = scalar_lea.hbm %s5428_s5, 512 }
  0xab   : > { %p4445_p8 = scmp.lt.u32.totalorder %s4893_s6, %s5428_s5  ;;  %p4446_p13 = scmp.lt.u32.totalorder %s4444_s10, %s4439_s25 }
  0xac   : > { %p4442_p3 = pnand %p4440_p1, %p5487_p11  ;;  %p4448_p5 = scmp.lt.u32.totalorder %s4439_s25, %s4893_s6 }
  0xad   : > { %p4447_p6 = por %p4446_p13, %p4445_p8 }
  0xae   : > { %p4443_p7 = pneg %p4442_p3 }
  0xaf   : > { %p4449_p2 = por %p4448_p5, %p4447_p6 }
  0xb1   : > { %p4450_p4 = pnand %p4449_p2, %p4443_p7 }
  0xb3   : > { %4453 = shalt.err (!%p4450_p4)
}
  0xb4   : > { %s4454_s8 = scalar_lea.vmem %s381_s22, 256  ;;  %s4605_s16 = smov [#allocation12]  }
  0xb5   : > { %p4455_p10 = scmp.ne.s32.totalorder %s381_s22, %s4454_s8  ;;  %s4459_s30 = sshll.u32 %s4605_s16, 4  ;;  %s4460_s30 = int_to_ptr.vmem [resolvable:$false] %s4459_s30 }
  0xb6   : > { %s4461_s24 = scalar_lea.vmem %s4460_s30, 512  ;;  %p4462_p1 = scmp.lt.s32.totalorder %s381_s22, %s4460_s30 }
  0xb7   : > { %p4457_p9 = pnand %p4455_p10, %p5487_p11  ;;  %p4463_p3 = scmp.lt.s32.totalorder %s4461_s24, %s4454_s8 }
  0xb9   : > { %p4458_p0 = pneg %p4457_p9  ;;  %p4464_p12 = por %p4463_p3, %p4462_p1 }
  0xbb   : > { %p4465_p8 = pnand %p4464_p12, %p4458_p0 }
  0xbd   : > { %4468 = shalt.err (!%p4465_p8)
}
  0xbe   : > { %p5490_p13 = scmp.ne.s32.totalorder %s5472_s21, 0  ;;  %p5491_p7 = scmp.ne.s32.totalorder %s5471_s18, 0 }
  0xbf   : > { %p5492_p6 = scmp.eq.s32.totalorder (!%p5491_p7), %s4685_s11, 0 }
  0xc0   : > { %3790 = dma.hbm_to_vmem [thread:$0]  (!%p5490_p13), %s4893_s6, 256, %s381_s22, %s368_s14  }
  0xc1   : > { %400 = sbr.rel (%p5491_p7) target bundleno = 931 (0x3a3), region = 48 }
  0xc8   : > { %4550 = dma.done.wait (%p5492_p6), [#allocation4], 1024   ;;  %p5493_p11 = pmov %p5492_p6 }
  0xc9   : > { %p5494_p5 = pmov %p5492_p6 }
  0xca   : > { %4552 = vsyncadd (%p5493_p11), [#allocation4], 4294966272 }
  0xcb   : > { %4554 = dma.done.wait (%p5494_p5), [#allocation7], 256   ;;  %p5495_p2 = pmov %p5494_p5 }
  0xcc   : > { %s414_s21 = sand.u32 1, %s4685_s11   ;;  %s4925_s26 = sand.u32 1, %s4579_s28  }
  0xcd   : > { %4556 = vsyncadd (%p5495_p2), [#allocation7], 4294967040  ;;  %s3347_s18 = sshll.u32 %s4925_s26, 11  ;;  %s415_s1 = scalar_lea.sflag [#allocation10], %s414_s21 }
  0xce   : > { %s4928_s23 = scalar_lea.vmem [#allocation9], %s3347_s18  ;;  %p5496_p12 = scmp.ne.s32.totalorder %s5466_s15, 0 }
  0xd0   : > { %4558 = dma.done.wait (%p5496_p12), %s415_s1, 32832  }
  0xd1   : > { %4560 = vsyncadd (%p5496_p12), %s415_s1, 4294934464  ;;  %s3348_s13 = sshll.u32 %s4925_s26, 2  ;;  %s3349_s3 = sshll.u32 %s4925_s26, 4 }
  0xd2   : > { %s4936_s20 = scalar_lea.vmem [#allocation11], %s3348_s13  ;;  %s433_s11 = scalar_lea.sflag [#allocation13], %s4925_s26 }
  0xd3   : > { %s4939_s19 = scalar_lea.vmem [#allocation12], %s3349_s3 }
  0xd4   : > { %4562 = dma.done.wait (%p5496_p12), %s433_s11, 256  }
  0xd5   : > { %4564 = vsyncadd (%p5496_p12), %s433_s11, 4294967040  ;;  %v3861_v0 = vld [vmem:[%s4928_s23 + $0x4] ss:$16 sps:$4 sm:$0xff]   ;;  %v3863_v1 = vld [vmem:[%s4928_s23 + $0xc] ss:$16 sps:$4 sm:$0xff]   ;;  %s5497_s15 = sld [smem:[#allocation25_spill]] }
  0xd6   : > { %2398 = vmatprep.subr.bf16.mxu0 %v3861_v0  ;;  %v3865_v2 = vld [vmem:[%s4928_s23] ss:$16 sps:$4 sm:$0xff]   ;;  %v3866_v3 = vld [vmem:[%s4928_s23 + $0x8] ss:$16 sps:$4 sm:$0xff]   ;;  %2562 = vmatprep.subr.bf16.mxu1 %v3863_v1  ;;  %v3867_v4 = vld [vmem:[%s4928_s23 + $0x24] ss:$16 sps:$4 sm:$0xff]  }
  0xd7   : > { %2399 = vmatpush1.bf16.msra.mxu0 %v3865_v2  ;;  %2563 = vmatpush1.bf16.msra.mxu1 %v3866_v3  ;;  %v3869_v5 = vld [vmem:[%s4928_s23 + $0x2c] ss:$16 sps:$4 sm:$0xff]   ;;  %v3871_v6 = vld [vmem:[%s4928_s23 + $0x20] ss:$16 sps:$4 sm:$0xff]   ;;  %v3872_v7 = vld [vmem:[%s4928_s23 + $0x28] ss:$16 sps:$4 sm:$0xff]  }
  0xd8   : > { %2400 = vmatprep.subr.bf16.mxu0 %v3867_v4  ;;  %2564 = vmatprep.subr.bf16.mxu1 %v3869_v5  ;;  %v3873_v8 = vld [vmem:[%s4928_s23 + $0x44] ss:$16 sps:$4 sm:$0xff]   ;;  %v3875_v9 = vld [vmem:[%s4928_s23 + $0x4c] ss:$16 sps:$4 sm:$0xff]   ;;  %v3877_v10 = vld [vmem:[%s4928_s23 + $0x40] ss:$16 sps:$4 sm:$0xff]  }
  0xd9   : > { %v3878_v11 = vld [vmem:[%s4928_s23 + $0x48] ss:$16 sps:$4 sm:$0xff]   ;;  %v3879_v12 = vld [vmem:[%s4928_s23 + $0x64] ss:$16 sps:$4 sm:$0xff]   ;;  %v3881_v13 = vld [vmem:[%s4928_s23 + $0x6c] ss:$16 sps:$4 sm:$0xff]  }
  0xda   : > { %v3883_v14 = vld [vmem:[%s4928_s23 + $0x60] ss:$16 sps:$4 sm:$0xff]   ;;  %v3884_v15 = vld [vmem:[%s4928_s23 + $0x68] ss:$16 sps:$4 sm:$0xff]   ;;  %v3885_v16 = vld [vmem:[%s4928_s23 + $0x84] ss:$16 sps:$4 sm:$0xff]  }
  0xdb   : > { %2401 = vmatpush1.bf16.msra.mxu0 %v3871_v6  ;;  %2565 = vmatpush1.bf16.msra.mxu1 %v3872_v7  ;;  %v3887_v17 = vld [vmem:[%s4928_s23 + $0x8c] ss:$16 sps:$4 sm:$0xff]   ;;  %v3889_v18 = vld [vmem:[%s4928_s23 + $0x80] ss:$16 sps:$4 sm:$0xff]   ;;  %v3890_v19 = vld [vmem:[%s4928_s23 + $0x88] ss:$16 sps:$4 sm:$0xff]  }
  0xdc   : > { %2402 = vmatprep.subr.bf16.mxu0 %v3873_v8  ;;  %2566 = vmatprep.subr.bf16.mxu1 %v3875_v9  ;;  %v3891_v20 = vld [vmem:[%s4928_s23 + $0xa4] ss:$16 sps:$4 sm:$0xff]   ;;  %v3893_v21 = vld [vmem:[%s4928_s23 + $0xac] ss:$16 sps:$4 sm:$0xff]   ;;  %v3895_v22 = vld [vmem:[%s4928_s23 + $0xa0] ss:$16 sps:$4 sm:$0xff]  }
  0xdd   : > { %v3896_v23 = vld [vmem:[%s4928_s23 + $0xa8] ss:$16 sps:$4 sm:$0xff]   ;;  %v3897_v24 = vld [vmem:[%s4928_s23 + $0xc4] ss:$16 sps:$4 sm:$0xff]   ;;  %v3899_v25 = vld [vmem:[%s4928_s23 + $0xcc] ss:$16 sps:$4 sm:$0xff]  }
  0xde   : > { %v3901_v26 = vld [vmem:[%s4928_s23 + $0xc0] ss:$16 sps:$4 sm:$0xff]   ;;  %v3902_v27 = vld [vmem:[%s4928_s23 + $0xc8] ss:$16 sps:$4 sm:$0xff]   ;;  %v3903_v28 = vld [vmem:[%s4928_s23 + $0xe4] ss:$16 sps:$4 sm:$0xff]  }
  0xdf   : > { %2403 = vmatpush1.bf16.msra.mxu0 %v3877_v10  ;;  %2567 = vmatpush1.bf16.msra.mxu1 %v3878_v11  ;;  %v3905_v29 = vld [vmem:[%s4928_s23 + $0xec] ss:$16 sps:$4 sm:$0xff]   ;;  %v3907_v30 = vld [vmem:[%s4928_s23 + $0xe0] ss:$16 sps:$4 sm:$0xff]   ;;  %v3908_v31 = vld [vmem:[%s4928_s23 + $0xe8] ss:$16 sps:$4 sm:$0xff]  }
  0xe0   : > { %2404 = vmatprep.subr.bf16.mxu0 %v3879_v12  ;;  %2568 = vmatprep.subr.bf16.mxu1 %v3881_v13  ;;  %v3909_v32 = vld [vmem:[%s4928_s23 + $0x104] ss:$16 sps:$4 sm:$0xff]   ;;  %v3911_v33 = vld [vmem:[%s4928_s23 + $0x10c] ss:$16 sps:$4 sm:$0xff]   ;;  %v3913_v34 = vld [vmem:[%s4928_s23 + $0x100] ss:$16 sps:$4 sm:$0xff]  }
  0xe1   : > { %v3914_v35 = vld [vmem:[%s4928_s23 + $0x108] ss:$16 sps:$4 sm:$0xff]   ;;  %v3915_v36 = vld [vmem:[%s4928_s23 + $0x124] ss:$16 sps:$4 sm:$0xff]   ;;  %v3917_v37 = vld [vmem:[%s4928_s23 + $0x12c] ss:$16 sps:$4 sm:$0xff]  }
  0xe2   : > { %v3919_v38 = vld [vmem:[%s4928_s23 + $0x120] ss:$16 sps:$4 sm:$0xff]   ;;  %v3920_v39 = vld [vmem:[%s4928_s23 + $0x128] ss:$16 sps:$4 sm:$0xff]   ;;  %v3921_v40 = vld [vmem:[%s4928_s23 + $0x144] ss:$16 sps:$4 sm:$0xff]  }
  0xe3   : > { %2405 = vmatpush1.bf16.msra.mxu0 %v3883_v14  ;;  %2569 = vmatpush1.bf16.msra.mxu1 %v3884_v15  ;;  %v3923_v41 = vld [vmem:[%s4928_s23 + $0x14c] ss:$16 sps:$4 sm:$0xff]   ;;  %v3925_v42 = vld [vmem:[%s4928_s23 + $0x140] ss:$16 sps:$4 sm:$0xff]   ;;  %v3926_v43 = vld [vmem:[%s4928_s23 + $0x148] ss:$16 sps:$4 sm:$0xff]  }
  0xe4   : > { %2406 = vmatprep.subr.bf16.mxu0 %v3885_v16  ;;  %2570 = vmatprep.subr.bf16.mxu1 %v3887_v17  ;;  %v3927_v44 = vld [vmem:[%s4928_s23 + $0x164] ss:$16 sps:$4 sm:$0xff]   ;;  %v3929_v45 = vld [vmem:[%s4928_s23 + $0x16c] ss:$16 sps:$4 sm:$0xff]   ;;  %v3931_v47 = vld [vmem:[%s4928_s23 + $0x160] ss:$16 sps:$4 sm:$0xff]  }
  0xe5   : > { %v512_v46 = vld [vmem:[#allocation3 + $0x8] sm:$0xff]  ;;  %v3933_v50 = vld [vmem:[%s4928_s23 + $0x184] ss:$16 sps:$4 sm:$0xff]   ;;  %v3937_v54 = vld [vmem:[%s4928_s23 + $0x180] ss:$16 sps:$4 sm:$0xff]   ;;  %s3352_s6 = sshll.u32 %s5497_s15, 6 }
  0xe6   : > { %v525_v48 = vrot.slane %v512_v46, 4  ;;  %v3932_v49 = vld [vmem:[%s4928_s23 + $0x168] ss:$16 sps:$4 sm:$0xff]   ;;  %v3935_v51 = vld [vmem:[%s4928_s23 + $0x18c] ss:$16 sps:$4 sm:$0xff]   ;;  %v511_v53 = vld [vmem:[#allocation3] sm:$0xff] }
  0xe7   : > { %2407 = vmatpush1.bf16.msra.mxu0 %v3889_v18  ;;  %2571 = vmatpush1.bf16.msra.mxu1 %v3890_v19  ;;  %v519_v56 = vrot.slane %v511_v53, 4  ;;  %v3938_v57 = vld [vmem:[%s4928_s23 + $0x188] ss:$16 sps:$4 sm:$0xff]   ;;  %v3939_v58 = vld [vmem:[%s4928_s23 + $0x1a4] ss:$16 sps:$4 sm:$0xff]   ;;  %p498_p4 = scmp.lt.s32.totalorder %s3352_s6, 127 }
  0xe8   : > { %2408 = vmatprep.subr.bf16.mxu0 %v3891_v20  ;;  %2572 = vmatprep.subr.bf16.mxu1 %v3893_v21  ;;  %v526_v52 = vadd.f32 %v525_v48, %v512_v46  ;;  %v3941_v59 = vld [vmem:[%s4928_s23 + $0x1ac] ss:$16 sps:$4 sm:$0xff]   ;;  %v3943_v62 = vld [vmem:[%s4928_s23 + $0x1a0] ss:$16 sps:$4 sm:$0xff]   ;;  %v3944_v1 = vld [vmem:[%s4928_s23 + $0x1a8] ss:$16 sps:$4 sm:$0xff]  }
  0xe9   : > { %v520_v61 = vadd.f32 %v519_v56, %v511_v53  ;;  %v3945_v2 = vld [vmem:[%s4928_s23 + $0x1c4] ss:$16 sps:$4 sm:$0xff]   ;;  %v3947_v3 = vld [vmem:[%s4928_s23 + $0x1cc] ss:$16 sps:$4 sm:$0xff]   ;;  %v3949_v6 = vld [vmem:[%s4928_s23 + $0x1c0] ss:$16 sps:$4 sm:$0xff]  }
  0xea   : > { %v527_v55 = vrot.slane %v526_v52, 2  ;;  %v3950_v9 = vld [vmem:[%s4928_s23 + $0x1c8] ss:$16 sps:$4 sm:$0xff]   ;;  %v3951_v10 = vld [vmem:[%s4928_s23 + $0x1e4] ss:$16 sps:$4 sm:$0xff]   ;;  %s5518_s6 = smov (!%p498_p4, %s3352_s6), 127 }
  0xeb   : > { %2409 = vmatpush1.bf16.msra.mxu0 %v3895_v22  ;;  %2573 = vmatpush1.bf16.msra.mxu1 %v3896_v23  ;;  %v521_v0 = vrot.slane %v520_v61, 2  ;;  %v3953_v11 = vld [vmem:[%s4928_s23 + $0x1ec] ss:$16 sps:$4 sm:$0xff]   ;;  %v3955_v14 = vld [vmem:[%s4928_s23 + $0x1e0] ss:$16 sps:$4 sm:$0xff]   ;;  %s3353_s29 = sshll.u32 %s5518_s6, 2 }
  0xec   : > { %2410 = vmatprep.subr.bf16.mxu0 %v3897_v24  ;;  %2574 = vmatprep.subr.bf16.mxu1 %v3899_v25  ;;  %v528_v60 = vadd.f32 %v527_v55, %v526_v52  ;;  %v3956_v15 = vld [vmem:[%s4928_s23 + $0x1e8] ss:$16 sps:$4 sm:$0xff]   ;;  %v3959_v18 = vld [vmem:[%s4928_s23 + $0x204] ss:$16 sps:$4 sm:$0xff]   ;;  %v3962_v20 = vld [vmem:[%s4928_s23 + $0x20c] ss:$16 sps:$4 sm:$0xff]  }
  0xed   : > { %v522_v5 = vadd.f32 %v521_v0, %v520_v61  ;;  %s5498_s25 = sld [smem:[#allocation33_spill]]  ;;  %s3350_s17 = sshll.u32 %s4925_s26, 5  ;;  %vm3087_vm0 = vcmask 80896  }
  0xee   : > { %v529_v63 = vrot.slane %v528_v60, 1  ;;  %s482_s10 = scalar_lea.vmem [#allocation14], %s3350_s17  ;;  %s5499_s12 = sld [smem:[#allocation27_spill]] }
  0xef   : > { %2411 = vmatpush1.bf16.msra.mxu0 %v3901_v26  ;;  %2575 = vmatpush1.bf16.msra.mxu1 %v3902_v27  ;;  %v523_v8 = vrot.slane %v522_v5, 1  ;;  %s3351_s7 = sshll.u32 %s4925_s26, 3  ;;  %s3668_s16 = sshll.u32 %s5497_s15, 9 }
  0xf0   : > { %2412 = vmatprep.subr.bf16.mxu0 %v3903_v28  ;;  %2576 = vmatprep.subr.bf16.mxu1 %v3905_v29  ;;  %v530_v4 = vadd.f32 %v529_v63, %v528_v60  ;;  %s5338_s8 = scalar_lea.vmem [#allocation15], %s3351_s7  ;;  %s3114_s30 = sshll.u32 %s482_s10, 4  ;;  %s3115_s30 = int_to_ptr.vmem [resolvable:$true] %s3114_s30 }
  0xf1   : > { %v524_v13 = vadd.f32 %v523_v8, %v522_v5  ;;  %v3960_v5 = vld [vmem:[%s4928_s23 + $0x208] ss:$16 sps:$4 sm:$0xff]   ;;  %s5500_s18 = sld [smem:[#allocation34_spill]]  ;;  %s4469_s13 = scalar_lea.vmem %s3115_s30, 512 }
  0xf2   : > { %v569_v7 = vmul.f32 0.125, %v530_v4  ;;  %p4470_p10 = scmp.ne.s32.totalorder %s3115_s30, %s4469_s13  ;;  %s4607_s3 = smov [#allocation14]  }
  0xf3   : > { %2413 = vmatpush1.bf16.msra.mxu0 %v3907_v30  ;;  %2577 = vmatpush1.bf16.msra.mxu1 %v3908_v31  ;;  %v568_v17 = vmul.f32 0.125, %v524_v13  ;;  %s5153_s27 = scalar_lea.vmem %s5498_s25, %s3353_s29 }
  0xf4   : > { %2414 = vmatprep.subr.bf16.mxu0 %v3909_v32  ;;  %2578 = vmatprep.subr.bf16.mxu1 %v3911_v33  ;;  %v577_v12 = vsub.f32 %v512_v46, %v569_v7  ;;  %p5501_p9 = scmp.ne.s32.totalorder %s5499_s12, 0 }
  0xf5   : > { %v576_v21 = vsub.f32 %v511_v53, %v568_v17  ;;  %v3974_v17 = vld [vmem:[%s4928_s23 + $0x24c] ss:$16 sps:$4 sm:$0xff]  }
  0xf6   : > { %v585_v16 = vmul.f32 %v577_v12, %v577_v12  ;;  %p4471_p0 = pnand %p4470_p10, %p5501_p9 }
  0xf7   : > { %2415 = vmatpush1.bf16.msra.mxu0 %v3913_v34  ;;  %2579 = vmatpush1.bf16.msra.mxu1 %v3914_v35  ;;  %v584_v23 = vmul.f32 %v576_v21, %v576_v21  ;;  %v674_v34 = vlaneseq  ;;  %s5346_s1 = scalar_lea.hbm %s5500_s18, %s3668_s16 }
  0xf8   : > { %2416 = vmatprep.subr.bf16.mxu0 %v3915_v36  ;;  %2580 = vmatprep.subr.bf16.mxu1 %v3917_v37  ;;  %v598_v19 = vrot.slane %v585_v16, 4  ;;  %p4472_p1 = pneg %p4471_p0 }
  0xf9   : > { %v592_v25 = vrot.slane %v584_v23, 4 }
  0xfa   : > { %v599_v22 = vadd.f32 %v598_v19, %v585_v16 }
  0xfb   : > { %2417 = vmatpush1.bf16.msra.mxu0 %v3919_v38  ;;  %2581 = vmatpush1.bf16.msra.mxu1 %v3920_v39  ;;  %v593_v27 = vadd.f32 %v592_v25, %v584_v23  ;;  %v5011_v38 = vshrl.u32 %v674_v34, 7  ;;  %v3977_v23 = vld [vmem:[%s4928_s23 + $0x264] ss:$16 sps:$4 sm:$0xff]   ;;  %v3980_v25 = vld [vmem:[%s4928_s23 + $0x26c] ss:$16 sps:$4 sm:$0xff]  }
  0xfc   : > { %2418 = vmatprep.subr.bf16.mxu0 %v3921_v40  ;;  %2582 = vmatprep.subr.bf16.mxu1 %v3923_v41  ;;  %v600_v24 = vrot.slane %v599_v22, 2  ;;  %v5016_v41 = vld [vmem:[#allocation6] sm:$0xff] }
  0xfd   : > { %v594_v29 = vrot.slane %v593_v27, 2  ;;  %v5014_v40 = vsub.s32 1, %v5011_v38 }
  0xfe   : > { %v601_v26 = vadd.f32 %v600_v24, %v599_v22  ;;  %v3972_v22 = vld [vmem:[%s4928_s23 + $0x248] ss:$16 sps:$4 sm:$0xff]  }
  0xff   : > { %2419 = vmatpush1.bf16.msra.mxu0 %v3925_v42  ;;  %2583 = vmatpush1.bf16.msra.mxu1 %v3926_v43  ;;  %v595_v31 = vadd.f32 %v594_v29, %v593_v27  ;;  %v5018_v42 = vld [vmem:[#allocation8] sm:$0xff]  ;;  %v681_v43 = vrot.slane %v5016_v41, %v5014_v40 }
 0x100   : > { %2420 = vmatprep.subr.bf16.mxu0 %v3927_v44  ;;  %2584 = vmatprep.subr.bf16.mxu1 %v3929_v45  ;;  %v602_v28 = vrot.slane %v601_v26, 1  ;;  %v5023_v44 = vsub.s32 0, %v5011_v38  ;;  %v514_v45 = vld [vmem:[#allocation3 + $0x18] sm:$0xff] }
 0x101   : > { %v596_v33 = vrot.slane %v595_v31, 1 }
 0x102   : > { %v603_v30 = vadd.f32 %v602_v28, %v601_v26  ;;  %v677_v53 = vrot.slane %v5016_v41, %v5023_v44  ;;  %v3975_v28 = vld [vmem:[%s4928_s23 + $0x260] ss:$16 sps:$4 sm:$0xff]  }
 0x103   : > { %2421 = vmatpush1.bf16.msra.mxu0 %v3931_v47  ;;  %2585 = vmatpush1.bf16.msra.mxu1 %v3932_v49  ;;  %v597_v36 = vadd.f32 %v596_v33, %v595_v31  ;;  %v537_v47 = vrot.slane %v514_v45, 4  ;;  %v731_v49 = vrot.slane %v5018_v42, %v5014_v40  ;;  %v3983_v31 = vld [vmem:[%s4928_s23 + $0x284] ss:$16 sps:$4 sm:$0xff]   ;;  %v3986_v33 = vld [vmem:[%s4928_s23 + $0x28c] ss:$16 sps:$4 sm:$0xff]  }
 0x104   : > { %2422 = vmatprep.subr.bf16.mxu0 %v3933_v50  ;;  %2586 = vmatprep.subr.bf16.mxu1 %v3935_v51  ;;  %v641_v32 = vmul.f32 0.125, %v603_v30  ;;  %v513_v51 = vld [vmem:[#allocation3 + $0x10] sm:$0xff]  ;;  %v3978_v30 = vld [vmem:[%s4928_s23 + $0x268] ss:$16 sps:$4 sm:$0xff]  }
 0x105   : > { %v640_v37 = vmul.f32 0.125, %v597_v36  ;;  %v538_v50 = vadd.f32 %v537_v47, %v514_v45  ;;  %v3981_v36 = vld [vmem:[%s4928_s23 + $0x280] ss:$16 sps:$4 sm:$0xff]  }
 0x106   : > { %v649_v35 = vadd.f32 1e-05, %v641_v32 }
 0x107   : > { %2423 = vmatpush1.bf16.msra.mxu0 %v3937_v54  ;;  %2587 = vmatpush1.bf16.msra.mxu1 %v3938_v57  ;;  %v648_v39 = vadd.f32 1e-05, %v640_v37  ;;  %v531_v54 = vrot.slane %v513_v51, 4  ;;  %v539_v56 = vrot.slane %v538_v50, 2 }
 0x108   : > { %2424 = vmatprep.subr.bf16.mxu0 %v3939_v58  ;;  %2588 = vmatprep.subr.bf16.mxu1 %v3941_v59  ;;  %4277 = vrsqrt.f32 %v649_v35  ;;  %v727_v59 = vrot.slane %v5018_v42, %v5023_v44 }
 0x109   : > { %4279 = vrsqrt.f32 %v648_v39  ;;  %v532_v60 = vadd.f32 %v531_v54, %v513_v51  ;;  %v540_v61 = vadd.f32 %v539_v56, %v538_v50  ;;  %v3984_v39 = vld [vmem:[%s4928_s23 + $0x288] ss:$16 sps:$4 sm:$0xff]   ;;  %v3993_v56 = vld [vmem:[%s4928_s23 + $0x2c0] ss:$16 sps:$4 sm:$0xff]  }
 0x10a   : > { %v3990_v50 = vld [vmem:[%s4928_s23 + $0x2a8] ss:$16 sps:$4 sm:$0xff]  }
 0x10b   : > { %2425 = vmatpush1.bf16.msra.mxu0 %v3943_v62  ;;  %2589 = vmatpush1.bf16.msra.mxu1 %v3944_v1  ;;  %v533_v0 = vrot.slane %v532_v60, 2  ;;  %v541_v1 = vrot.slane %v540_v61, 1 }
 0x10c   : > { %2426 = vmatprep.subr.bf16.mxu0 %v3945_v2  ;;  %2590 = vmatprep.subr.bf16.mxu1 %v3947_v3  ;;  %v3957_v2 = vld [vmem:[%s4928_s23 + $0x200] ss:$16 sps:$4 sm:$0xff]  }
 0x10d   : > { %v534_v4 = vadd.f32 %v533_v0, %v532_v60  ;;  %v542_v7 = vadd.f32 %v541_v1, %v540_v61  ;;  %v3999_v61 = vld [vmem:[%s4928_s23 + $0x2e0] ss:$16 sps:$4 sm:$0xff]   ;;  %v4010_v0 = vld [vmem:[%s4928_s23 + $0x30c] ss:$16 sps:$4 sm:$0xff]   ;;  %v5072_v1 = vsub.s32 3, %v5011_v38 }
 0x10f   : > { %2427 = vmatpush1.bf16.msra.mxu0 %v3949_v6  ;;  %2591 = vmatpush1.bf16.msra.mxu1 %v3950_v9  ;;  %v3965_v6 = vld [vmem:[%s4928_s23 + $0x224] ss:$16 sps:$4 sm:$0xff]   ;;  %v3968_v9 = vld [vmem:[%s4928_s23 + $0x22c] ss:$16 sps:$4 sm:$0xff]  }
 0x110   : > { %2428 = vmatprep.subr.bf16.mxu0 %v3951_v10  ;;  %2592 = vmatprep.subr.bf16.mxu1 %v3953_v11  ;;  %v535_v10 = vrot.slane %v534_v4, 1  ;;  %v571_v11 = vmul.f32 0.125, %v542_v7  ;;  %v689_v7 = vrot.slane %v5016_v41, %v5072_v1 }
 0x112   : > { %v4278_v46 = vpop.eup %4277  ;;  %v536_v13 = vadd.f32 %v535_v10, %v534_v4  ;;  %v5038_v16 = vsub.f32 %v514_v45, %v571_v11  ;;  %v4008_v4 = vld [vmem:[%s4928_s23 + $0x308] ss:$16 sps:$4 sm:$0xff]  }
 0x113   : > { %2429 = vmatpush1.bf16.msra.mxu0 %v3955_v14  ;;  %2593 = vmatpush1.bf16.msra.mxu1 %v3956_v15  ;;  %v665_v48 = vmul.f32 %v4278_v46, %v577_v12  ;;  %v4280_v55 = vpop.eup %4279  ;;  %v3963_v12 = vld [vmem:[%s4928_s23 + $0x220] ss:$16 sps:$4 sm:$0xff]   ;;  %v3966_v14 = vld [vmem:[%s4928_s23 + $0x228] ss:$16 sps:$4 sm:$0xff]   ;;  %v3971_v15 = vld [vmem:[%s4928_s23 + $0x244] ss:$16 sps:$4 sm:$0xff]  }
 0x114   : > { %2439 = vmatprep.subr.bf16.mxu0 %v3959_v18  ;;  %2603 = vmatprep.subr.bf16.mxu1 %v3962_v20  ;;  %v664_v58 = vmul.f32 %v4280_v55, %v576_v21  ;;  %v570_v18 = vmul.f32 0.125, %v536_v13  ;;  %v587_v19 = vmul.f32 %v5038_v16, %v5038_v16  ;;  %v3969_v20 = vld [vmem:[%s4928_s23 + $0x240] ss:$16 sps:$4 sm:$0xff]   ;;  %v3992_v46 = vld [vmem:[%s4928_s23 + $0x2ac] ss:$16 sps:$4 sm:$0xff]  }
 0x115   : > { %v715_v52 = vmul.f32 %v681_v43, %v665_v48  ;;  %v3989_v43 = vld [vmem:[%s4928_s23 + $0x2a4] ss:$16 sps:$4 sm:$0xff]   ;;  %v4014_v13 = vld [vmem:[%s4928_s23 + $0x328] ss:$16 sps:$4 sm:$0xff]  }
 0x116   : > { %v714_v63 = vmul.f32 %v677_v53, %v664_v58  ;;  %v5044_v21 = vsub.f32 %v513_v51, %v570_v18  ;;  %v610_v24 = vrot.slane %v587_v19, 4  ;;  %v3995_v51 = vld [vmem:[%s4928_s23 + $0x2c4] ss:$16 sps:$4 sm:$0xff]   ;;  %v3998_v53 = vld [vmem:[%s4928_s23 + $0x2cc] ss:$16 sps:$4 sm:$0xff]  }
 0x117   : > { %v765_v57 = vadd.f32 %v731_v49, %v715_v52  ;;  %v3987_v49 = vld [vmem:[%s4928_s23 + $0x2a0] ss:$16 sps:$4 sm:$0xff]   ;;  %v4001_v58 = vld [vmem:[%s4928_s23 + $0x2e4] ss:$16 sps:$4 sm:$0xff]  }
 0x118   : > { %v764_v3 = vadd.f32 %v727_v59, %v714_v63  ;;  %v586_v26 = vmul.f32 %v5044_v21, %v5044_v21  ;;  %v611_v27 = vadd.f32 %v610_v24, %v587_v19  ;;  %v4004_v59 = vld [vmem:[%s4928_s23 + $0x2ec] ss:$16 sps:$4 sm:$0xff]   ;;  %v4007_v63 = vld [vmem:[%s4928_s23 + $0x304] ss:$16 sps:$4 sm:$0xff]   ;;  %v4017_v24 = vld [vmem:[%s4928_s23 + $0x340] ss:$16 sps:$4 sm:$0xff]  }
 0x119   : > { %v3670_v62 = vpack.c.bf16 %v765_v57, %v765_v57  ;;  %v3996_v57 = vld [vmem:[%s4928_s23 + $0x2c8] ss:$16 sps:$4 sm:$0xff]   ;;  %v5085_v18 = vld [vmem:[#allocation3 + $0x20] sm:$0xff] }
 0x11a   : > { %v3669_v8 = vpack.c.bf16 %v764_v3, %v764_v3  ;;  %v604_v29 = vrot.slane %v586_v26, 4  ;;  %v612_v32 = vrot.slane %v611_v27, 2  ;;  %v4005_v3 = vld [vmem:[%s4928_s23 + $0x300] ss:$16 sps:$4 sm:$0xff]   ;;  %v4019_v19 = vld [vmem:[%s4928_s23 + $0x344] ss:$16 sps:$4 sm:$0xff]  }
 0x11b   : > { %2430 = vmatprep.mubr.bf16.mxu0 %v3670_v62  ;;  %2594 = vmatprep.mubr.bf16.mxu1 %v3670_v62  ;;  %v4002_v62 = vld [vmem:[%s4928_s23 + $0x2e8] ss:$16 sps:$4 sm:$0xff]  }
 0x11c   : > { %2431 = vmatmul.mubr.bf16.vlgmr.msra.gmra.mrb[0].mxu0 %v3669_v8  ;;  %2595 = vmatmul.mubr.bf16.vlgmr.msra.gmra.mrb[0].mxu1 %v3669_v8  ;;  %v605_v34 = vadd.f32 %v604_v29, %v586_v26  ;;  %v613_v35 = vadd.f32 %v612_v32, %v611_v27  ;;  %v516_v8 = vld [vmem:[#allocation3 + $0x28] sm:$0xff]  ;;  %v4025_v29 = vld [vmem:[%s4928_s23 + $0x364] ss:$16 sps:$4 sm:$0xff]  }
 0x11d   : > { %2440 = vmatpush1.bf16.msra.mxu0 %v3957_v2  ;;  %2604 = vmatpush1.bf16.msra.mxu1 %v3960_v5  ;;  %v4013_v5 = vld [vmem:[%s4928_s23 + $0x324] ss:$16 sps:$4 sm:$0xff]   ;;  %v549_v11 = vrot.slane %v516_v8, 4  ;;  %v4020_v27 = vld [vmem:[%s4928_s23 + $0x348] ss:$16 sps:$4 sm:$0xff]  }
 0x11e   : > { %2441 = vmatprep.subr.bf16.mxu0 %v3965_v6  ;;  %2605 = vmatprep.subr.bf16.mxu1 %v3968_v9  ;;  %v606_v37 = vrot.slane %v605_v34, 2  ;;  %v614_v45 = vrot.slane %v613_v35, 1  ;;  %v4016_v6 = vld [vmem:[%s4928_s23 + $0x32c] ss:$16 sps:$4 sm:$0xff]  }
 0x120   : > { %v615_v47 = vadd.f32 %v614_v45, %v613_v35  ;;  %v607_v48 = vadd.f32 %v606_v37, %v605_v34  ;;  %v4023_v34 = vld [vmem:[%s4928_s23 + $0x360] ss:$16 sps:$4 sm:$0xff]   ;;  %v4026_v35 = vld [vmem:[%s4928_s23 + $0x368] ss:$16 sps:$4 sm:$0xff]   ;;  %v4031_v37 = vld [vmem:[%s4928_s23 + $0x384] ss:$16 sps:$4 sm:$0xff]  }
 0x121   : > { %2442 = vmatpush1.bf16.msra.mxu0 %v3963_v12  ;;  %2606 = vmatpush1.bf16.msra.mxu1 %v3966_v14  ;;  %v4011_v12 = vld [vmem:[%s4928_s23 + $0x320] ss:$16 sps:$4 sm:$0xff]  }
 0x122   : > { %2443 = vmatprep.subr.bf16.mxu0 %v3971_v15  ;;  %2607 = vmatprep.subr.bf16.mxu1 %v3974_v17  ;;  %v643_v52 = vmul.f32 0.125, %v615_v47  ;;  %v608_v55 = vrot.slane %v607_v48, 1  ;;  %v739_v15 = vrot.slane %v5018_v42, %v5072_v1  ;;  %v550_v17 = vadd.f32 %v549_v11, %v516_v8  ;;  %v4050_v11 = vld [vmem:[%s4928_s23 + $0x3e8] ss:$16 sps:$4 sm:$0xff]  }
 0x123   : > { %v5101_v47 = vsub.s32 2, %v5011_v38 }
 0x124   : > { %v651_v54 = vadd.f32 1e-05, %v643_v52  ;;  %v609_v60 = vadd.f32 %v608_v55, %v607_v48  ;;  %v4040_v52 = vld [vmem:[%s4928_s23 + $0x3ac] ss:$16 sps:$4 sm:$0xff]   ;;  %v4035_v55 = vld [vmem:[%s4928_s23 + $0x3a0] ss:$16 sps:$4 sm:$0xff]  }
 0x125   : > { %2444 = vmatpush1.bf16.msra.mxu0 %v3969_v20  ;;  %2608 = vmatpush1.bf16.msra.mxu1 %v3972_v22  ;;  %v4022_v20 = vld [vmem:[%s4928_s23 + $0x34c] ss:$16 sps:$4 sm:$0xff]  }
 0x126   : > { %2445 = vmatprep.subr.bf16.mxu0 %v3977_v23  ;;  %2609 = vmatprep.subr.bf16.mxu1 %v3980_v25  ;;  %4281 = vrsqrt.f32 %v651_v54  ;;  %v642_v2 = vmul.f32 0.125, %v609_v60  ;;  %v543_v23 = vrot.slane %v5085_v18, 4  ;;  %v4043_v60 = vld [vmem:[%s4928_s23 + $0x3c4] ss:$16 sps:$4 sm:$0xff]  }
 0x128   : > { %v650_v10 = vadd.f32 1e-05, %v642_v2  ;;  %v544_v26 = vadd.f32 %v543_v23, %v5085_v18 }
 0x129   : > { %2446 = vmatpush1.bf16.msra.mxu0 %v3975_v28  ;;  %2610 = vmatpush1.bf16.msra.mxu1 %v3978_v30  ;;  %v4028_v30 = vld [vmem:[%s4928_s23 + $0x36c] ss:$16 sps:$4 sm:$0xff]  }
 0x12a   : > { %2447 = vmatprep.subr.bf16.mxu0 %v3983_v31  ;;  %2611 = vmatprep.subr.bf16.mxu1 %v3986_v33  ;;  %4283 = vrsqrt.f32 %v650_v10  ;;  %v545_v33 = vrot.slane %v544_v26, 2 }
 0x12c   : > { %v546_v45 = vadd.f32 %v545_v33, %v544_v26  ;;  %v4073_v33 = vld [vmem:[%s4928_s23 + $0x464] ss:$16 sps:$4 sm:$0xff]  }
 0x12d   : > { %2448 = vmatpush1.bf16.msra.mxu0 %v3981_v36  ;;  %2612 = vmatpush1.bf16.msra.mxu1 %v3984_v39  ;;  %v4034_v39 = vld [vmem:[%s4928_s23 + $0x38c] ss:$16 sps:$4 sm:$0xff]  }
 0x12e   : > { %2449 = vmatprep.subr.bf16.mxu0 %v3989_v43  ;;  %2613 = vmatprep.subr.bf16.mxu1 %v3992_v46  ;;  %v4029_v46 = vld [vmem:[%s4928_s23 + $0x380] ss:$16 sps:$4 sm:$0xff]   ;;  %v547_v54 = vrot.slane %v546_v45, 1 }
 0x130   : > { %v4282_v9 = vpop.eup %4281 }
 0x131   : > { %2450 = vmatpush1.bf16.msra.mxu0 %v3987_v49  ;;  %2614 = vmatpush1.bf16.msra.mxu1 %v3990_v50  ;;  %v667_v14 = vmul.f32 %v4282_v9, %v5038_v16  ;;  %v551_v16 = vrot.slane %v550_v17, 2  ;;  %v4032_v49 = vld [vmem:[%s4928_s23 + $0x388] ss:$16 sps:$4 sm:$0xff]   ;;  %v4047_v9 = vld [vmem:[%s4928_s23 + $0x3e0] ss:$16 sps:$4 sm:$0xff]  }
 0x132   : > { %2451 = vmatprep.subr.bf16.mxu0 %v3995_v51  ;;  %2615 = vmatprep.subr.bf16.mxu1 %v3998_v53  ;;  %v4037_v51 = vld [vmem:[%s4928_s23 + $0x3a4] ss:$16 sps:$4 sm:$0xff]  }
 0x133   : > { %v717_v22 = vmul.f32 %v689_v7, %v667_v14  ;;  %v552_v28 = vadd.f32 %v551_v16, %v550_v17  ;;  %v4058_v14 = vld [vmem:[%s4928_s23 + $0x40c] ss:$16 sps:$4 sm:$0xff]   ;;  %v4061_v16 = vld [vmem:[%s4928_s23 + $0x424] ss:$16 sps:$4 sm:$0xff]  }
 0x134   : > { %v4284_v48 = vpop.eup %4283 }
 0x135   : > { %2452 = vmatpush1.bf16.msra.mxu0 %v3993_v56  ;;  %2616 = vmatpush1.bf16.msra.mxu1 %v3996_v57  ;;  %v767_v25 = vadd.f32 %v739_v15, %v717_v22  ;;  %v553_v32 = vrot.slane %v552_v28, 1  ;;  %v666_v56 = vmul.f32 %v4284_v48, %v5044_v21  ;;  %v685_v57 = vrot.slane %v5016_v41, %v5101_v47  ;;  %v4056_v22 = vld [vmem:[%s4928_s23 + $0x408] ss:$16 sps:$4 sm:$0xff]  }
 0x136   : > { %2453 = vmatprep.subr.bf16.mxu0 %v4001_v58  ;;  %2617 = vmatprep.subr.bf16.mxu1 %v4004_v59  ;;  %v4038_v58 = vld [vmem:[%s4928_s23 + $0x3a8] ss:$16 sps:$4 sm:$0xff]   ;;  %v735_v21 = vrot.slane %v5018_v42, %v5101_v47 }
 0x137   : > { %v3672_v31 = vpack.c.bf16 %v767_v25, %v767_v25  ;;  %v554_v36 = vadd.f32 %v553_v32, %v552_v28  ;;  %v716_v2 = vmul.f32 %v685_v57, %v666_v56  ;;  %v4067_v28 = vld [vmem:[%s4928_s23 + $0x444] ss:$16 sps:$4 sm:$0xff]   ;;  %v4068_v32 = vld [vmem:[%s4928_s23 + $0x448] ss:$16 sps:$4 sm:$0xff]  }
 0x139   : > { %2454 = vmatpush1.bf16.msra.mxu0 %v3999_v61  ;;  %2618 = vmatpush1.bf16.msra.mxu1 %v4002_v62  ;;  %v573_v43 = vmul.f32 0.125, %v554_v36  ;;  %v4046_v61 = vld [vmem:[%s4928_s23 + $0x3cc] ss:$16 sps:$4 sm:$0xff]   ;;  %v766_v10 = vadd.f32 %v735_v21, %v716_v2  ;;  %v4071_v36 = vld [vmem:[%s4928_s23 + $0x460] ss:$16 sps:$4 sm:$0xff]  }
 0x13a   : > { %2455 = vmatprep.subr.bf16.mxu0 %v4007_v63  ;;  %2619 = vmatprep.subr.bf16.mxu1 %v4010_v0  ;;  %v548_v63 = vadd.f32 %v547_v54, %v546_v45  ;;  %v4041_v0 = vld [vmem:[%s4928_s23 + $0x3c0] ss:$16 sps:$4 sm:$0xff]   ;;  %v4082_v45 = vld [vmem:[%s4928_s23 + $0x48c] ss:$16 sps:$4 sm:$0xff]  }
 0x13b   : > { %2471 = vmatprep.mubr.bf16.mxu0 %v3672_v31  ;;  %2635 = vmatprep.mubr.bf16.mxu1 %v3672_v31  ;;  %v5104_v50 = vsub.f32 %v516_v8, %v573_v43  ;;  %v4065_v31 = vld [vmem:[%s4928_s23 + $0x440] ss:$16 sps:$4 sm:$0xff]   ;;  %v4079_v43 = vld [vmem:[%s4928_s23 + $0x484] ss:$16 sps:$4 sm:$0xff]  }
 0x13c   : > { %v572_v8 = vmul.f32 0.125, %v548_v63 }
 0x13d   : > { %2456 = vmatpush1.bf16.msra.mxu0 %v4005_v3  ;;  %2620 = vmatpush1.bf16.msra.mxu1 %v4008_v4  ;;  %v589_v53 = vmul.f32 %v5104_v50, %v5104_v50  ;;  %v4044_v3 = vld [vmem:[%s4928_s23 + $0x3c8] ss:$16 sps:$4 sm:$0xff]  }
 0x13e   : > { %2457 = vmatprep.subr.bf16.mxu0 %v4013_v5  ;;  %2621 = vmatprep.subr.bf16.mxu1 %v4016_v6  ;;  %v4049_v5 = vld [vmem:[%s4928_s23 + $0x3e4] ss:$16 sps:$4 sm:$0xff]   ;;  %v4052_v6 = vld [vmem:[%s4928_s23 + $0x3ec] ss:$16 sps:$4 sm:$0xff]   ;;  %v5128_v17 = vsub.f32 %v5085_v18, %v572_v8  ;;  %v4059_v18 = vld [vmem:[%s4928_s23 + $0x420] ss:$16 sps:$4 sm:$0xff]  }
 0x13f   : > { %v622_v59 = vrot.slane %v589_v53, 4 }
 0x140   : > { %v588_v26 = vmul.f32 %v5128_v17, %v5128_v17 }
 0x141   : > { %2458 = vmatpush1.bf16.msra.mxu0 %v4011_v12  ;;  %2622 = vmatpush1.bf16.msra.mxu1 %v4014_v13  ;;  %v623_v62 = vadd.f32 %v622_v59, %v589_v53  ;;  %v4055_v13 = vld [vmem:[%s4928_s23 + $0x404] ss:$16 sps:$4 sm:$0xff]   ;;  %v4080_v53 = vld [vmem:[%s4928_s23 + $0x488] ss:$16 sps:$4 sm:$0xff]   ;;  %v4088_v59 = vld [vmem:[%s4928_s23 + $0x4ac] ss:$16 sps:$4 sm:$0xff]  }
 0x142   : > { %2459 = vmatprep.subr.bf16.mxu0 %v4019_v19  ;;  %2623 = vmatprep.subr.bf16.mxu1 %v4022_v20  ;;  %v4053_v19 = vld [vmem:[%s4928_s23 + $0x400] ss:$16 sps:$4 sm:$0xff]   ;;  %v3671_v20 = vpack.c.bf16 %v766_v10, %v766_v10 }
 0x143   : > { %v624_v4 = vrot.slane %v623_v62, 2 }
 0x145   : > { %2460 = vmatpush1.bf16.msra.mxu0 %v4017_v24  ;;  %2624 = vmatpush1.bf16.msra.mxu1 %v4020_v27  ;;  %v625_v7 = vadd.f32 %v624_v4, %v623_v62  ;;  %v4064_v24 = vld [vmem:[%s4928_s23 + $0x42c] ss:$16 sps:$4 sm:$0xff]   ;;  %v4062_v27 = vld [vmem:[%s4928_s23 + $0x428] ss:$16 sps:$4 sm:$0xff]   ;;  %v4089_v4 = vld [vmem:[%s4928_s23 + $0x4c0] ss:$16 sps:$4 sm:$0xff]  }
 0x146   : > { %2461 = vmatprep.subr.bf16.mxu0 %v4025_v29  ;;  %2625 = vmatprep.subr.bf16.mxu1 %v4028_v30  ;;  %v4070_v29 = vld [vmem:[%s4928_s23 + $0x44c] ss:$16 sps:$4 sm:$0xff]   ;;  %v616_v30 = vrot.slane %v588_v26, 4  ;;  %v4086_v62 = vld [vmem:[%s4928_s23 + $0x4a8] ss:$16 sps:$4 sm:$0xff]  }
 0x147   : > { %v626_v12 = vrot.slane %v625_v7, 1 }
 0x149   : > { %2462 = vmatpush1.bf16.msra.mxu0 %v4023_v34  ;;  %2626 = vmatpush1.bf16.msra.mxu1 %v4026_v35  ;;  %v627_v15 = vadd.f32 %v626_v12, %v625_v7  ;;  %v4076_v34 = vld [vmem:[%s4928_s23 + $0x46c] ss:$16 sps:$4 sm:$0xff]   ;;  %v696_v35 = vsub.s32 5, %v5011_v38  ;;  %v4097_v7 = vld [vmem:[%s4928_s23 + $0x4e4] ss:$16 sps:$4 sm:$0xff]  }
 0x14a   : > { %2463 = vmatprep.subr.bf16.mxu0 %v4031_v37  ;;  %2627 = vmatprep.subr.bf16.mxu1 %v4034_v39  ;;  %v617_v37 = vadd.f32 %v616_v30, %v588_v26  ;;  %v4074_v39 = vld [vmem:[%s4928_s23 + $0x468] ss:$16 sps:$4 sm:$0xff]  }
 0x14b   : > { %v645_v23 = vmul.f32 0.125, %v627_v15  ;;  %v697_v48 = vrot.slane %v5016_v41, %v696_v35  ;;  %v747_v57 = vrot.slane %v5018_v42, %v696_v35  ;;  %v4094_v42 = vld [vmem:[%s4928_s23 + $0x4cc] ss:$16 sps:$4 sm:$0xff]   ;;  %v4098_v12 = vld [vmem:[%s4928_s23 + $0x4e8] ss:$16 sps:$4 sm:$0xff]  }
 0x14c   : > { %v618_v54 = vrot.slane %v617_v37, 2  ;;  %v4110_v30 = vld [vmem:[%s4928_s23 + $0x528] ss:$16 sps:$4 sm:$0xff]  }
 0x14d   : > { %2464 = vmatpush1.bf16.msra.mxu0 %v4029_v46  ;;  %2628 = vmatpush1.bf16.msra.mxu1 %v4032_v49  ;;  %v653_v25 = vadd.f32 1e-05, %v645_v23  ;;  %v518_v46 = vld [vmem:[#allocation3 + $0x38] sm:$0xff]  ;;  %v4101_v23 = vld [vmem:[%s4928_s23 + $0x500] ss:$16 sps:$4 sm:$0xff]  }
 0x14e   : > { %2465 = vmatprep.subr.bf16.mxu0 %v4037_v51  ;;  %2629 = vmatprep.subr.bf16.mxu1 %v4040_v52  ;;  %v561_v49 = vrot.slane %v518_v46, 4  ;;  %v4077_v52 = vld [vmem:[%s4928_s23 + $0x480] ss:$16 sps:$4 sm:$0xff]   ;;  %v619_v63 = vadd.f32 %v618_v54, %v617_v37  ;;  %v4127_v54 = vld [vmem:[%s4928_s23 + $0x584] ss:$16 sps:$4 sm:$0xff]  }
 0x14f   : > { %4285 = vrsqrt.f32 %v653_v25  ;;  %v4109_v25 = vld [vmem:[%s4928_s23 + $0x524] ss:$16 sps:$4 sm:$0xff]   ;;  %v4113_v37 = vld [vmem:[%s4928_s23 + $0x540] ss:$16 sps:$4 sm:$0xff]  }
 0x151   : > { %2466 = vmatpush1.bf16.msra.mxu0 %v4035_v55  ;;  %2630 = vmatpush1.bf16.msra.mxu1 %v4038_v58  ;;  %v4085_v55 = vld [vmem:[%s4928_s23 + $0x4a4] ss:$16 sps:$4 sm:$0xff]   ;;  %v562_v58 = vadd.f32 %v561_v49, %v518_v46 }
 0x152   : > { %2467 = vmatprep.subr.bf16.mxu0 %v4043_v60  ;;  %2631 = vmatprep.subr.bf16.mxu1 %v4046_v61  ;;  %v4083_v61 = vld [vmem:[%s4928_s23 + $0x4a0] ss:$16 sps:$4 sm:$0xff]  }
 0x153   : > { %v563_v60 = vrot.slane %v562_v58, 2 }
 0x155   : > { %2468 = vmatpush1.bf16.msra.mxu0 %v4041_v0  ;;  %2632 = vmatpush1.bf16.msra.mxu1 %v4044_v3  ;;  %v4091_v0 = vld [vmem:[%s4928_s23 + $0x4c4] ss:$16 sps:$4 sm:$0xff]  }
 0x156   : > { %2469 = vmatprep.subr.bf16.mxu0 %v4049_v5  ;;  %2633 = vmatprep.subr.bf16.mxu1 %v4052_v6  ;;  %v4092_v5 = vld [vmem:[%s4928_s23 + $0x4c8] ss:$16 sps:$4 sm:$0xff]   ;;  %v620_v6 = vrot.slane %v619_v63, 1 }
 0x159   : > { %2470 = vmatpush1.bf16.msra.mxu0 %v4047_v9  ;;  %2634 = vmatpush1.bf16.msra.mxu1 %v4050_v11  ;;  %v4286_v51 = vpop.eup %4285  ;;  %v4100_v9 = vld [vmem:[%s4928_s23 + $0x4ec] ss:$16 sps:$4 sm:$0xff]   ;;  %v4095_v11 = vld [vmem:[%s4928_s23 + $0x4e0] ss:$16 sps:$4 sm:$0xff]  }
 0x15a   : > { %2480 = vmatprep.subr.bf16.mxu0 %v4055_v13  ;;  %2644 = vmatprep.subr.bf16.mxu1 %v4058_v14  ;;  %v669_v56 = vmul.f32 %v4286_v51, %v5104_v50  ;;  %v564_v50 = vadd.f32 %v563_v60, %v562_v58  ;;  %v621_v13 = vadd.f32 %v620_v6, %v619_v63  ;;  %v4103_v14 = vld [vmem:[%s4928_s23 + $0x504] ss:$16 sps:$4 sm:$0xff]   ;;  %v692_v58 = vsub.s32 4, %v5011_v38  ;;  %v4128_v60 = vld [vmem:[%s4928_s23 + $0x588] ss:$16 sps:$4 sm:$0xff]  }
 0x15c   : > { %2472 = vmatmul.mubr.bf16.vlgmr.msra.gmra.mrb[0].mxu0 %v3671_v20  ;;  %2636 = vmatmul.mubr.bf16.vlgmr.msra.gmra.mrb[0].mxu1 %v3671_v20  ;;  %v719_v41 = vmul.f32 %v697_v48, %v669_v56  ;;  %v565_v3 = vrot.slane %v564_v50, 1 }
 0x15d   : > { %2481 = vmatpush1.bf16.msra.mxu0 %v4053_v19  ;;  %2645 = vmatpush1.bf16.msra.mxu1 %v4056_v22  ;;  %v4106_v19 = vld [vmem:[%s4928_s23 + $0x50c] ss:$16 sps:$4 sm:$0xff]   ;;  %v5178_v22 = vld [vmem:[#allocation3 + $0x30] sm:$0xff] }
 0x15e   : > { %2482 = vmatprep.subr.bf16.mxu0 %v4061_v16  ;;  %2646 = vmatprep.subr.bf16.mxu1 %v4064_v24  ;;  %v769_v2 = vadd.f32 %v747_v57, %v719_v41  ;;  %v566_v8 = vadd.f32 %v565_v3, %v564_v50  ;;  %v4104_v16 = vld [vmem:[%s4928_s23 + $0x508] ss:$16 sps:$4 sm:$0xff]   ;;  %v644_v24 = vmul.f32 0.125, %v621_v13  ;;  %v4125_v41 = vld [vmem:[%s4928_s23 + $0x580] ss:$16 sps:$4 sm:$0xff]   ;;  %v704_v3 = vsub.s32 7, %v5011_v38 }
 0x15f   : > { %v4145_v13 = vld [vmem:[%s4928_s23 + $0x5e4] ss:$16 sps:$4 sm:$0xff]  }
 0x160   : > { %v3674_v21 = vpack.c.bf16 %v769_v2, %v769_v2  ;;  %v575_v10 = vmul.f32 0.125, %v566_v8  ;;  %v5204_v2 = vld [vmem:[#allocation6] sm:$0xff] }
 0x161   : > { %2483 = vmatpush1.bf16.msra.mxu0 %v4059_v18  ;;  %2647 = vmatpush1.bf16.msra.mxu1 %v4062_v27  ;;  %v555_v18 = vrot.slane %v5178_v22, 4  ;;  %v4112_v27 = vld [vmem:[%s4928_s23 + $0x52c] ss:$16 sps:$4 sm:$0xff]   ;;  %v693_v50 = vrot.slane %v5204_v2, %v692_v58 }
 0x162   : > { %2484 = vmatprep.subr.bf16.mxu0 %v4067_v28  ;;  %2648 = vmatprep.subr.bf16.mxu1 %v4070_v29  ;;  %v5173_v15 = vsub.f32 %v518_v46, %v575_v10  ;;  %v4107_v29 = vld [vmem:[%s4928_s23 + $0x520] ss:$16 sps:$4 sm:$0xff]   ;;  %v4140_v10 = vld [vmem:[%s4928_s23 + $0x5c8] ss:$16 sps:$4 sm:$0xff]  }
 0x163   : > { %2512 = vmatprep.mubr.bf16.mxu0 %v3674_v21  ;;  %2676 = vmatprep.mubr.bf16.mxu1 %v3674_v21  ;;  %v556_v35 = vadd.f32 %v555_v18, %v5178_v22  ;;  %v4134_v21 = vld [vmem:[%s4928_s23 + $0x5a8] ss:$16 sps:$4 sm:$0xff]   ;;  %v4151_v18 = vld [vmem:[%s4928_s23 + $0x604] ss:$16 sps:$4 sm:$0xff]  }
 0x164   : > { %v591_v20 = vmul.f32 %v5173_v15, %v5173_v15 }
 0x165   : > { %2485 = vmatpush1.bf16.msra.mxu0 %v4065_v31  ;;  %2649 = vmatpush1.bf16.msra.mxu1 %v4068_v32  ;;  %v652_v31 = vadd.f32 1e-05, %v644_v24  ;;  %v4115_v32 = vld [vmem:[%s4928_s23 + $0x544] ss:$16 sps:$4 sm:$0xff]   ;;  %v557_v48 = vrot.slane %v556_v35, 2 }
 0x166   : > { %2486 = vmatprep.subr.bf16.mxu0 %v4073_v33  ;;  %2650 = vmatprep.subr.bf16.mxu1 %v4076_v34  ;;  %v634_v26 = vrot.slane %v591_v20, 4  ;;  %v4118_v34 = vld [vmem:[%s4928_s23 + $0x54c] ss:$16 sps:$4 sm:$0xff]   ;;  %v4143_v24 = vld [vmem:[%s4928_s23 + $0x5e0] ss:$16 sps:$4 sm:$0xff]  }
 0x167   : > { %4287 = vrsqrt.f32 %v652_v31  ;;  %v558_v57 = vadd.f32 %v557_v48, %v556_v35  ;;  %v4152_v31 = vld [vmem:[%s4928_s23 + $0x608] ss:$16 sps:$4 sm:$0xff]   ;;  %v4169_v48 = vld [vmem:[%s4928_s23 + $0x664] ss:$16 sps:$4 sm:$0xff]  }
 0x168   : > { %v635_v28 = vadd.f32 %v634_v26, %v591_v20 }
 0x169   : > { %2487 = vmatpush1.bf16.msra.mxu0 %v4071_v36  ;;  %2651 = vmatpush1.bf16.msra.mxu1 %v4074_v39  ;;  %v4116_v39 = vld [vmem:[%s4928_s23 + $0x548] ss:$16 sps:$4 sm:$0xff]   ;;  %v559_v63 = vrot.slane %v558_v57, 1 }
 0x16a   : > { %2488 = vmatprep.subr.bf16.mxu0 %v4079_v43  ;;  %2652 = vmatprep.subr.bf16.mxu1 %v4082_v45  ;;  %v636_v33 = vrot.slane %v635_v28, 2  ;;  %v4121_v43 = vld [vmem:[%s4928_s23 + $0x564] ss:$16 sps:$4 sm:$0xff]   ;;  %v4124_v45 = vld [vmem:[%s4928_s23 + $0x56c] ss:$16 sps:$4 sm:$0xff]  }
 0x16b   : > { %v560_v6 = vadd.f32 %v559_v63, %v558_v57  ;;  %v4173_v57 = vld [vmem:[%s4928_s23 + $0x680] ss:$16 sps:$4 sm:$0xff]   ;;  %v4187_v63 = vld [vmem:[%s4928_s23 + $0x6c4] ss:$16 sps:$4 sm:$0xff]  }
 0x16c   : > { %v637_v36 = vadd.f32 %v636_v33, %v635_v28  ;;  %v4160_v33 = vld [vmem:[%s4928_s23 + $0x62c] ss:$16 sps:$4 sm:$0xff]  }
 0x16d   : > { %2489 = vmatpush1.bf16.msra.mxu0 %v4077_v52  ;;  %2653 = vmatpush1.bf16.msra.mxu1 %v4080_v53  ;;  %v4119_v52 = vld [vmem:[%s4928_s23 + $0x560] ss:$16 sps:$4 sm:$0xff]   ;;  %v4122_v53 = vld [vmem:[%s4928_s23 + $0x568] ss:$16 sps:$4 sm:$0xff]  }
 0x16e   : > { %2490 = vmatprep.subr.bf16.mxu0 %v4085_v55  ;;  %2654 = vmatprep.subr.bf16.mxu1 %v4088_v59  ;;  %v638_v46 = vrot.slane %v637_v36, 1  ;;  %v4130_v55 = vld [vmem:[%s4928_s23 + $0x58c] ss:$16 sps:$4 sm:$0xff]  }
 0x170   : > { %v639_v49 = vadd.f32 %v638_v46, %v637_v36  ;;  %v4158_v36 = vld [vmem:[%s4928_s23 + $0x628] ss:$16 sps:$4 sm:$0xff]  }
 0x171   : > { %2491 = vmatpush1.bf16.msra.mxu0 %v4083_v61  ;;  %2655 = vmatpush1.bf16.msra.mxu1 %v4086_v62  ;;  %v4288_v59 = vpop.eup %4287  ;;  %v4133_v61 = vld [vmem:[%s4928_s23 + $0x5a4] ss:$16 sps:$4 sm:$0xff]   ;;  %v4136_v62 = vld [vmem:[%s4928_s23 + $0x5ac] ss:$16 sps:$4 sm:$0xff]   ;;  %v4164_v46 = vld [vmem:[%s4928_s23 + $0x648] ss:$16 sps:$4 sm:$0xff]  }
 0x172   : > { %2492 = vmatprep.subr.bf16.mxu0 %v4091_v0  ;;  %2656 = vmatprep.subr.bf16.mxu1 %v4094_v42  ;;  %v647_v51 = vmul.f32 0.125, %v639_v49  ;;  %v668_v0 = vmul.f32 %v4288_v59, %v5128_v17  ;;  %v4131_v42 = vld [vmem:[%s4928_s23 + $0x5a0] ss:$16 sps:$4 sm:$0xff]   ;;  %v4172_v49 = vld [vmem:[%s4928_s23 + $0x66c] ss:$16 sps:$4 sm:$0xff]  }
 0x173   : > { %v4181_v59 = vld [vmem:[%s4928_s23 + $0x6a4] ss:$16 sps:$4 sm:$0xff]  }
 0x174   : > { %v655_v56 = vadd.f32 1e-05, %v647_v51  ;;  %v718_v17 = vmul.f32 %v693_v50, %v668_v0  ;;  %v4190_v0 = vld [vmem:[%s4928_s23 + $0x6cc] ss:$16 sps:$4 sm:$0xff]  }
 0x175   : > { %2493 = vmatpush1.bf16.msra.mxu0 %v4089_v4  ;;  %2657 = vmatpush1.bf16.msra.mxu1 %v4092_v5  ;;  %v4139_v4 = vld [vmem:[%s4928_s23 + $0x5c4] ss:$16 sps:$4 sm:$0xff]   ;;  %v4142_v5 = vld [vmem:[%s4928_s23 + $0x5cc] ss:$16 sps:$4 sm:$0xff]  }
 0x176   : > { %2494 = vmatprep.subr.bf16.mxu0 %v4097_v7  ;;  %2658 = vmatprep.subr.bf16.mxu1 %v4100_v9  ;;  %4289 = vrsqrt.f32 %v655_v56  ;;  %v5212_v7 = vld [vmem:[#allocation8] sm:$0xff]  ;;  %v4137_v9 = vld [vmem:[%s4928_s23 + $0x5c0] ss:$16 sps:$4 sm:$0xff]  }
 0x177   : > { %v743_v8 = vrot.slane %v5212_v7, %v692_v58  ;;  %v755_v20 = vrot.slane %v5212_v7, %v704_v3  ;;  %v4176_v58 = vld [vmem:[%s4928_s23 + $0x688] ss:$16 sps:$4 sm:$0xff]  }
 0x179   : > { %2495 = vmatpush1.bf16.msra.mxu0 %v4095_v11  ;;  %2659 = vmatpush1.bf16.msra.mxu1 %v4098_v12  ;;  %v705_v11 = vrot.slane %v5204_v2, %v704_v3  ;;  %v4193_v3 = vld [vmem:[%s4928_s23 + $0x6e4] ss:$16 sps:$4 sm:$0xff]  }
 0x17a   : > { %2496 = vmatprep.subr.bf16.mxu0 %v4103_v14  ;;  %2660 = vmatprep.subr.bf16.mxu1 %v4106_v19  ;;  %v4148_v14 = vld [vmem:[%s4928_s23 + $0x5ec] ss:$16 sps:$4 sm:$0xff]  }
 0x17d   : > { %2497 = vmatpush1.bf16.msra.mxu0 %v4101_v23  ;;  %2661 = vmatpush1.bf16.msra.mxu1 %v4104_v16  ;;  %v574_v23 = vmul.f32 0.125, %v560_v6  ;;  %v768_v16 = vadd.f32 %v743_v8, %v718_v17  ;;  %v4191_v6 = vld [vmem:[%s4928_s23 + $0x6e0] ss:$16 sps:$4 sm:$0xff]   ;;  %v4194_v17 = vld [vmem:[%s4928_s23 + $0x6e8] ss:$16 sps:$4 sm:$0xff]  }
 0x17e   : > { %2498 = vmatprep.subr.bf16.mxu0 %v4109_v25  ;;  %2662 = vmatprep.subr.bf16.mxu1 %v4112_v27  ;;  %v4146_v25 = vld [vmem:[%s4928_s23 + $0x5e8] ss:$16 sps:$4 sm:$0xff]   ;;  %v4154_v27 = vld [vmem:[%s4928_s23 + $0x60c] ss:$16 sps:$4 sm:$0xff]   ;;  %v4199_v8 = vld [vmem:[%s4928_s23 + $0x704] ss:$16 sps:$4 sm:$0xff]  }
 0x180   : > { %v4290_v12 = vpop.eup %4289 }
 0x181   : > { %2499 = vmatpush1.bf16.msra.mxu0 %v4107_v29  ;;  %2663 = vmatpush1.bf16.msra.mxu1 %v4110_v30  ;;  %v671_v19 = vmul.f32 %v4290_v12, %v5173_v15  ;;  %v5227_v15 = vsub.f32 %v5178_v22, %v574_v23  ;;  %v3673_v29 = vpack.c.bf16 %v768_v16, %v768_v16  ;;  %v4149_v30 = vld [vmem:[%s4928_s23 + $0x600] ss:$16 sps:$4 sm:$0xff]   ;;  %v4200_v12 = vld [vmem:[%s4928_s23 + $0x708] ss:$16 sps:$4 sm:$0xff]   ;;  %v4211_v16 = vld [vmem:[%s4928_s23 + $0x744] ss:$16 sps:$4 sm:$0xff]  }
 0x182   : > { %2500 = vmatprep.subr.bf16.mxu0 %v4115_v32  ;;  %2664 = vmatprep.subr.bf16.mxu1 %v4118_v34  ;;  %v4157_v32 = vld [vmem:[%s4928_s23 + $0x624] ss:$16 sps:$4 sm:$0xff]   ;;  %v4155_v22 = vld [vmem:[%s4928_s23 + $0x620] ss:$16 sps:$4 sm:$0xff]   ;;  %v4206_v23 = vld [vmem:[%s4928_s23 + $0x728] ss:$16 sps:$4 sm:$0xff]  }
 0x183   : > { %v721_v26 = vmul.f32 %v705_v11, %v671_v19  ;;  %v590_v35 = vmul.f32 %v5227_v15, %v5227_v15  ;;  %v4197_v11 = vld [vmem:[%s4928_s23 + $0x700] ss:$16 sps:$4 sm:$0xff]  }
 0x185   : > { %2501 = vmatpush1.bf16.msra.mxu0 %v4113_v37  ;;  %2665 = vmatpush1.bf16.msra.mxu1 %v4116_v39  ;;  %v771_v28 = vadd.f32 %v755_v20, %v721_v26  ;;  %v4163_v37 = vld [vmem:[%s4928_s23 + $0x644] ss:$16 sps:$4 sm:$0xff]   ;;  %v4166_v39 = vld [vmem:[%s4928_s23 + $0x64c] ss:$16 sps:$4 sm:$0xff]   ;;  %v4203_v20 = vld [vmem:[%s4928_s23 + $0x720] ss:$16 sps:$4 sm:$0xff]  }
 0x186   : > { %2502 = vmatprep.subr.bf16.mxu0 %v4121_v43  ;;  %2666 = vmatprep.subr.bf16.mxu1 %v4124_v45  ;;  %v628_v43 = vrot.slane %v590_v35, 4  ;;  %v4161_v45 = vld [vmem:[%s4928_s23 + $0x640] ss:$16 sps:$4 sm:$0xff]   ;;  %v4212_v26 = vld [vmem:[%s4928_s23 + $0x748] ss:$16 sps:$4 sm:$0xff]  }
 0x187   : > { %v3676_v34 = vpack.c.bf16 %v771_v28, %v771_v28  ;;  %v4215_v28 = vld [vmem:[%s4928_s23 + $0x760] ss:$16 sps:$4 sm:$0xff]  }
 0x188   : > { %v629_v51 = vadd.f32 %v628_v43, %v590_v35  ;;  %v4224_v35 = vld [vmem:[%s4928_s23 + $0x788] ss:$16 sps:$4 sm:$0xff]  }
 0x189   : > { %2503 = vmatpush1.bf16.msra.mxu0 %v4119_v52  ;;  %2667 = vmatpush1.bf16.msra.mxu1 %v4122_v53  ;;  %v4167_v52 = vld [vmem:[%s4928_s23 + $0x660] ss:$16 sps:$4 sm:$0xff]   ;;  %v4170_v53 = vld [vmem:[%s4928_s23 + $0x668] ss:$16 sps:$4 sm:$0xff]  }
 0x18a   : > { %2504 = vmatprep.subr.bf16.mxu0 %v4127_v54  ;;  %2668 = vmatprep.subr.bf16.mxu1 %v4130_v55  ;;  %v4175_v54 = vld [vmem:[%s4928_s23 + $0x684] ss:$16 sps:$4 sm:$0xff]   ;;  %v4178_v55 = vld [vmem:[%s4928_s23 + $0x68c] ss:$16 sps:$4 sm:$0xff]   ;;  %v630_v56 = vrot.slane %v629_v51, 2 }
 0x18b   : > { %v4230_v43 = vld [vmem:[%s4928_s23 + $0x7a8] ss:$16 sps:$4 sm:$0xff]  }
 0x18d   : > { %2505 = vmatpush1.bf16.msra.mxu0 %v4125_v41  ;;  %2669 = vmatpush1.bf16.msra.mxu1 %v4128_v60  ;;  %v4184_v41 = vld [vmem:[%s4928_s23 + $0x6ac] ss:$16 sps:$4 sm:$0xff]   ;;  %v631_v60 = vadd.f32 %v630_v56, %v629_v51  ;;  %v4241_v51 = vld [vmem:[%s4928_s23 + $0x7e4] ss:$16 sps:$4 sm:$0xff]  }
 0x18e   : > { %2506 = vmatprep.subr.bf16.mxu0 %v4133_v61  ;;  %2670 = vmatprep.subr.bf16.mxu1 %v4136_v62  ;;  %v4179_v61 = vld [vmem:[%s4928_s23 + $0x6a0] ss:$16 sps:$4 sm:$0xff]   ;;  %v4182_v62 = vld [vmem:[%s4928_s23 + $0x6a8] ss:$16 sps:$4 sm:$0xff]  }
 0x18f   : > { %v632_v50 = vrot.slane %v631_v60, 1  ;;  %v4246_v56 = vld [vmem:[%s5153_s27 + $0xc0] sm:$0xff]  }
 0x191   : > { %2507 = vmatpush1.bf16.msra.mxu0 %v4131_v42  ;;  %2671 = vmatpush1.bf16.msra.mxu1 %v4134_v21  ;;  %v4185_v42 = vld [vmem:[%s4928_s23 + $0x6c0] ss:$16 sps:$4 sm:$0xff]   ;;  %v4188_v21 = vld [vmem:[%s4928_s23 + $0x6c8] ss:$16 sps:$4 sm:$0xff]  }
 0x192   : > { %2508 = vmatprep.subr.bf16.mxu0 %v4139_v4  ;;  %2672 = vmatprep.subr.bf16.mxu1 %v4142_v5  ;;  %v4196_v4 = vld [vmem:[%s4928_s23 + $0x6ec] ss:$16 sps:$4 sm:$0xff]   ;;  %v633_v5 = vadd.f32 %v632_v50, %v631_v60  ;;  %v4255_v50 = vld [vmem:[%s5153_s27 + $0x10] sm:$0xff]  }
 0x193   : > { %v4250_v60 = vld [vmem:[%s5153_s27 + $0xc8] sm:$0xff]  }
 0x195   : > { %2509 = vmatpush1.bf16.msra.mxu0 %v4137_v9  ;;  %2673 = vmatpush1.bf16.msra.mxu1 %v4140_v10  ;;  %v4202_v9 = vld [vmem:[%s4928_s23 + $0x70c] ss:$16 sps:$4 sm:$0xff]   ;;  %v646_v10 = vmul.f32 0.125, %v633_v5 }
 0x196   : > { %2510 = vmatprep.subr.bf16.mxu0 %v4145_v13  ;;  %2674 = vmatprep.subr.bf16.mxu1 %v4148_v14  ;;  %v4205_v13 = vld [vmem:[%s4928_s23 + $0x724] ss:$16 sps:$4 sm:$0xff]   ;;  %v4208_v14 = vld [vmem:[%s4928_s23 + $0x72c] ss:$16 sps:$4 sm:$0xff]  }
 0x197   : > { %v654_v19 = vadd.f32 1e-05, %v646_v10  ;;  %v4260_v5 = vld [vmem:[%s5153_s27 + $0x98] sm:$0xff]   ;;  %v4265_v10 = vld [vmem:[%s5153_s27 + $0x68] sm:$0xff]  }
 0x199   : > { %2511 = vmatpush1.bf16.msra.mxu0 %v4143_v24  ;;  %2675 = vmatpush1.bf16.msra.mxu1 %v4146_v25  ;;  %v4214_v24 = vld [vmem:[%s4928_s23 + $0x74c] ss:$16 sps:$4 sm:$0xff]   ;;  %4291 = vrsqrt.f32 %v654_v19  ;;  %v4209_v25 = vld [vmem:[%s4928_s23 + $0x740] ss:$16 sps:$4 sm:$0xff]  }
 0x19a   : > { %2521 = vmatprep.subr.bf16.mxu0 %v4151_v18  ;;  %2685 = vmatprep.subr.bf16.mxu1 %v4154_v27  ;;  %v4217_v18 = vld [vmem:[%s4928_s23 + $0x764] ss:$16 sps:$4 sm:$0xff]   ;;  %v4220_v27 = vld [vmem:[%s4928_s23 + $0x76c] ss:$16 sps:$4 sm:$0xff]  }
 0x19b   : > { %v4270_v19 = vld [vmem:[%s5153_s27 + $0xf0] sm:$0xff]  }
 0x19c   : > { %2513 = vmatmul.mubr.bf16.vlgmr.msra.gmra.mrb[0].mxu0 %v3673_v29  ;;  %2677 = vmatmul.mubr.bf16.vlgmr.msra.gmra.mrb[0].mxu1 %v3673_v29  ;;  %v4218_v29 = vld [vmem:[%s4928_s23 + $0x768] ss:$16 sps:$4 sm:$0xff]  }
 0x19d   : > { %2522 = vmatpush1.bf16.msra.mxu0 %v4149_v30  ;;  %2686 = vmatpush1.bf16.msra.mxu1 %v4152_v31  ;;  %v4223_v30 = vld [vmem:[%s4928_s23 + $0x784] ss:$16 sps:$4 sm:$0xff]   ;;  %v4226_v31 = vld [vmem:[%s4928_s23 + $0x78c] ss:$16 sps:$4 sm:$0xff]  }
 0x19e   : > { %2523 = vmatprep.subr.bf16.mxu0 %v4157_v32  ;;  %2687 = vmatprep.subr.bf16.mxu1 %v4160_v33  ;;  %v700_v32 = vsub.s32 6, %v5011_v38  ;;  %v4227_v38 = vld [vmem:[%s4928_s23 + $0x7a0] ss:$16 sps:$4 sm:$0xff]  }
 0x19f   : > { %2553 = vmatprep.mubr.bf16.mxu0 %v3676_v34  ;;  %2717 = vmatprep.mubr.bf16.mxu1 %v3676_v34  ;;  %v4221_v34 = vld [vmem:[%s4928_s23 + $0x780] ss:$16 sps:$4 sm:$0xff]  }
 0x1a1   : > { %2524 = vmatpush1.bf16.msra.mxu0 %v4155_v22  ;;  %2688 = vmatpush1.bf16.msra.mxu1 %v4158_v36  ;;  %v4229_v22 = vld [vmem:[%s4928_s23 + $0x7a4] ss:$16 sps:$4 sm:$0xff]   ;;  %v4232_v36 = vld [vmem:[%s4928_s23 + $0x7ac] ss:$16 sps:$4 sm:$0xff]  }
 0x1a2   : > { %2525 = vmatprep.subr.bf16.mxu0 %v4163_v37  ;;  %2689 = vmatprep.subr.bf16.mxu1 %v4166_v39  ;;  %v701_v39 = vrot.slane %v5204_v2, %v700_v32  ;;  %v4233_v2 = vld [vmem:[%s4928_s23 + $0x7c0] ss:$16 sps:$4 sm:$0xff]  }
 0x1a3   : > { %v4292_v33 = vpop.eup %4291 }
 0x1a4   : > { %v670_v37 = vmul.f32 %v4292_v33, %v5227_v15  ;;  %v4236_v15 = vld [vmem:[%s4928_s23 + $0x7c8] ss:$16 sps:$4 sm:$0xff]  }
 0x1a5   : > { %2526 = vmatpush1.bf16.msra.mxu0 %v4161_v45  ;;  %2690 = vmatpush1.bf16.msra.mxu1 %v4164_v46  ;;  %v4235_v45 = vld [vmem:[%s4928_s23 + $0x7c4] ss:$16 sps:$4 sm:$0xff]   ;;  %v4238_v46 = vld [vmem:[%s4928_s23 + $0x7cc] ss:$16 sps:$4 sm:$0xff]  }
 0x1a6   : > { %2527 = vmatprep.subr.bf16.mxu0 %v4169_v48  ;;  %2691 = vmatprep.subr.bf16.mxu1 %v4172_v49  ;;  %v720_v48 = vmul.f32 %v701_v39, %v670_v37  ;;  %v751_v49 = vrot.slane %v5212_v7, %v700_v32  ;;  %v4245_v7 = vld [vmem:[%s5153_s27 + $0x40] sm:$0xff]  }
 0x1a9   : > { %2528 = vmatpush1.bf16.msra.mxu0 %v4167_v52  ;;  %2692 = vmatpush1.bf16.msra.mxu1 %v4170_v53  ;;  %v4244_v52 = vld [vmem:[%s4928_s23 + $0x7ec] ss:$16 sps:$4 sm:$0xff]   ;;  %v770_v53 = vadd.f32 %v751_v49, %v720_v48 }
 0x1aa   : > { %2529 = vmatprep.subr.bf16.mxu0 %v4175_v54  ;;  %2693 = vmatprep.subr.bf16.mxu1 %v4178_v55  ;;  %v4239_v54 = vld [vmem:[%s4928_s23 + $0x7e0] ss:$16 sps:$4 sm:$0xff]   ;;  %v4242_v55 = vld [vmem:[%s4928_s23 + $0x7e8] ss:$16 sps:$4 sm:$0xff]   ;;  %s3094_s23 = scalar_lea.sflag [#allocation5], %s4925_s26 }
 0x1ad   : > { %2530 = vmatpush1.bf16.msra.mxu0 %v4173_v57  ;;  %2694 = vmatpush1.bf16.msra.mxu1 %v4176_v58  ;;  %v3675_v57 = vpack.c.bf16 %v770_v53, %v770_v53  ;;  %v4247_v58 = vld [vmem:[%s5153_s27] sm:$0xff]  }
 0x1ae   : > { %2531 = vmatprep.subr.bf16.mxu0 %v4181_v59  ;;  %2695 = vmatprep.subr.bf16.mxu1 %v4184_v41  ;;  %v4248_v59 = vld [vmem:[%s5153_s27 + $0x80] sm:$0xff]   ;;  %v4249_v41 = vld [vmem:[%s5153_s27 + $0x48] sm:$0xff]  }
 0x1b1   : > { %2532 = vmatpush1.bf16.msra.mxu0 %v4179_v61  ;;  %2696 = vmatpush1.bf16.msra.mxu1 %v4182_v62  ;;  %v4251_v61 = vld [vmem:[%s5153_s27 + $0x8] sm:$0xff]  }
 0x1b2   : > { %2533 = vmatprep.subr.bf16.mxu0 %v4187_v63  ;;  %2697 = vmatprep.subr.bf16.mxu1 %v4190_v0  ;;  %v4252_v62 = vld [vmem:[%s5153_s27 + $0x88] sm:$0xff]   ;;  %v4253_v63 = vld [vmem:[%s5153_s27 + $0x50] sm:$0xff]  }
 0x1b3   : > { %v4254_v0 = vld [vmem:[%s5153_s27 + $0xd0] sm:$0xff]  }
 0x1b5   : > { %2534 = vmatpush1.bf16.msra.mxu0 %v4185_v42  ;;  %2698 = vmatpush1.bf16.msra.mxu1 %v4188_v21  ;;  %v4256_v42 = vld [vmem:[%s5153_s27 + $0x90] sm:$0xff]   ;;  %v4257_v21 = vld [vmem:[%s5153_s27 + $0x58] sm:$0xff]  }
 0x1b6   : > { %2535 = vmatprep.subr.bf16.mxu0 %v4193_v3  ;;  %2699 = vmatprep.subr.bf16.mxu1 %v4196_v4  ;;  %v4258_v3 = vld [vmem:[%s5153_s27 + $0xd8] sm:$0xff]  }
 0x1b7   : > { %v4259_v4 = vld [vmem:[%s5153_s27 + $0x18] sm:$0xff]  }
 0x1b9   : > { %2536 = vmatpush1.bf16.msra.mxu0 %v4191_v6  ;;  %2700 = vmatpush1.bf16.msra.mxu1 %v4194_v17  ;;  %v4261_v6 = vld [vmem:[%s5153_s27 + $0x60] sm:$0xff]  }
 0x1ba   : > { %2537 = vmatprep.subr.bf16.mxu0 %v4199_v8  ;;  %2701 = vmatprep.subr.bf16.mxu1 %v4202_v9  ;;  %v4262_v17 = vld [vmem:[%s5153_s27 + $0xe0] sm:$0xff]  }
 0x1bb   : > { %v4263_v8 = vld [vmem:[%s5153_s27 + $0x20] sm:$0xff]  }
 0x1bc   : > { %v4264_v9 = vld [vmem:[%s5153_s27 + $0xa0] sm:$0xff]  }
 0x1bd   : > { %2538 = vmatpush1.bf16.msra.mxu0 %v4197_v11  ;;  %2702 = vmatpush1.bf16.msra.mxu1 %v4200_v12  ;;  %v4266_v11 = vld [vmem:[%s5153_s27 + $0xe8] sm:$0xff]  }
 0x1be   : > { %2539 = vmatprep.subr.bf16.mxu0 %v4205_v13  ;;  %2703 = vmatprep.subr.bf16.mxu1 %v4208_v14  ;;  %v4267_v12 = vld [vmem:[%s5153_s27 + $0x28] sm:$0xff]   ;;  %v4269_v14 = vld [vmem:[%s5153_s27 + $0x70] sm:$0xff]  }
 0x1bf   : > { %v4268_v13 = vld [vmem:[%s5153_s27 + $0xa8] sm:$0xff]  }
 0x1c1   : > { %2540 = vmatpush1.bf16.msra.mxu0 %v4203_v20  ;;  %2704 = vmatpush1.bf16.msra.mxu1 %v4206_v23  ;;  %v4271_v20 = vld [vmem:[%s5153_s27 + $0x30] sm:$0xff]  }
 0x1c2   : > { %2541 = vmatprep.subr.bf16.mxu0 %v4211_v16  ;;  %2705 = vmatprep.subr.bf16.mxu1 %v4214_v24  ;;  %v4272_v23 = vld [vmem:[%s5153_s27 + $0xb0] sm:$0xff]   ;;  %v4273_v16 = vld [vmem:[%s5153_s27 + $0x78] sm:$0xff]  }
 0x1c3   : > { %v4274_v24 = vld [vmem:[%s5153_s27 + $0xf8] sm:$0xff]  }
 0x1c5   : > { %2542 = vmatpush1.bf16.msra.mxu0 %v4209_v25  ;;  %2706 = vmatpush1.bf16.msra.mxu1 %v4212_v26  ;;  %v4275_v25 = vld [vmem:[%s5153_s27 + $0x38] sm:$0xff]  }
 0x1c6   : > { %2543 = vmatprep.subr.bf16.mxu0 %v4217_v18  ;;  %2707 = vmatprep.subr.bf16.mxu1 %v4220_v27  ;;  %v4276_v26 = vld [vmem:[%s5153_s27 + $0xb8] sm:$0xff]   ;;  %v1068_v18 = vld [vmem:[%s4936_s20] sm:$0xf]  ;;  %s4473_s20 = sshll.u32 %s4607_s3, 4  ;;  %s4474_s20 = int_to_ptr.vmem [resolvable:$false] %s4473_s20 }
 0x1c7   : > { %v2726_v27 = vld [vmem:[%s4939_s19] sm:$0xff]  ;;  %v1085_v32 = vrot.slane %v1068_v18, %v5072_v1  ;;  %s4475_s11 = scalar_lea.vmem %s4474_s20, 1024  ;;  %p4476_p3 = scmp.lt.s32.totalorder %s3115_s30, %s4474_s20 }
 0x1c8   : > { %v2728_v33 = vunpack.c.l.bf16 %v2726_v27  ;;  %p4477_p8 = scmp.lt.s32.totalorder %s4475_s11, %s4469_s13 }
 0x1c9   : > { %2544 = vmatpush1.bf16.msra.mxu0 %v4215_v28  ;;  %2708 = vmatpush1.bf16.msra.mxu1 %v4218_v29  ;;  %v2727_v28 = vld [vmem:[%s4939_s19 + $0x8] sm:$0xff]  ;;  %v1073_v29 = vrot.slane %v1068_v18, %v5023_v44 }
 0x1ca   : > { %2545 = vmatprep.subr.bf16.mxu0 %v4223_v30  ;;  %2709 = vmatprep.subr.bf16.mxu1 %v4226_v31  ;;  %v1081_v30 = vrot.slane %v1068_v18, %v5101_v47  ;;  %v1077_v31 = vrot.slane %v1068_v18, %v5014_v40  ;;  %v2731_v37 = vunpack.c.h.bf16 %v2727_v28  ;;  %p4478_p13 = por %p4477_p8, %p4476_p3 }
 0x1cc   : > { %p4479_p7 = pnand %p4478_p13, %p4472_p1 }
 0x1cd   : > { %2546 = vmatpush1.bf16.msra.mxu0 %v4221_v34  ;;  %2710 = vmatpush1.bf16.msra.mxu1 %v4224_v35  ;;  %v2730_v34 = vunpack.c.l.bf16 %v2727_v28 }
 0x1ce   : > { %2547 = vmatprep.subr.bf16.mxu0 %v4229_v22  ;;  %2711 = vmatprep.subr.bf16.mxu1 %v4232_v36  ;;  %v2729_v36 = vunpack.c.h.bf16 %v2726_v27 }
 0x1d1   : > { %2548 = vmatpush1.bf16.msra.mxu0 %v4227_v38  ;;  %2712 = vmatpush1.bf16.msra.mxu1 %v4230_v43 }
 0x1d2   : > { %2549 = vmatprep.subr.bf16.mxu0 %v4235_v45  ;;  %2713 = vmatprep.subr.bf16.mxu1 %v4238_v46 }
 0x1d5   : > { %2550 = vmatpush1.bf16.msra.mxu0 %v4233_v2  ;;  %2714 = vmatpush1.bf16.msra.mxu1 %v4236_v15 }
 0x1d6   : > { %2551 = vmatprep.subr.bf16.mxu0 %v4241_v51  ;;  %2715 = vmatprep.subr.bf16.mxu1 %v4244_v52 }
 0x1d9   : > { %2552 = vmatpush1.bf16.msra.mxu0 %v4239_v54  ;;  %2716 = vmatpush1.bf16.msra.mxu1 %v4242_v55 }
 0x1da   : > { %3677 = vmatprep.subr.bf16.mxu0 %v4245_v7  ;;  %3699 = vmatprep.subr.bf16.mxu1 %v4246_v56 }
 0x1dc   : > { %2554 = vmatmul.mubr.bf16.vlgmr.msra.gmra.mrb[0].mxu0 %v3675_v57  ;;  %2718 = vmatmul.mubr.bf16.vlgmr.msra.gmra.mrb[0].mxu1 %v3675_v57 }
 0x1dd   : > { %3678 = vmatpush3.bf16.msra.mxu0 %v4247_v58  ;;  %3700 = vmatpush3.bf16.msra.mxu1 %v4248_v59  ;;  %v4606_v59 = vmov 0.0  }
 0x1de   : > { %3679 = vmatprep.subr.bf16.mxu0 %v4249_v41  ;;  %3701 = vmatprep.subr.bf16.mxu1 %v4250_v60  ;;  %3088 = vst.msk [vmem:[%s5338_s8] sm:$0xff] %vm3087_vm0, %v4606_v59 }
 0x1e1   : > { %3680 = vmatpush3.bf16.msra.mxu0 %v4251_v61  ;;  %3702 = vmatpush3.bf16.msra.mxu1 %v4252_v62 }
 0x1e2   : > { %3681 = vmatprep.subr.bf16.mxu0 %v4253_v63  ;;  %3703 = vmatprep.subr.bf16.mxu1 %v4254_v0 }
 0x1e5   : > { %3682 = vmatpush3.bf16.msra.mxu0 %v4255_v50  ;;  %3704 = vmatpush3.bf16.msra.mxu1 %v4256_v42 }
 0x1e6   : > { %3683 = vmatprep.subr.bf16.mxu0 %v4257_v21  ;;  %3705 = vmatprep.subr.bf16.mxu1 %v4258_v3 }
 0x1e9   : > { %3684 = vmatpush3.bf16.msra.mxu0 %v4259_v4  ;;  %3706 = vmatpush3.bf16.msra.mxu1 %v4260_v5 }
 0x1ea   : > { %3685 = vmatprep.subr.bf16.mxu0 %v4261_v6  ;;  %3707 = vmatprep.subr.bf16.mxu1 %v4262_v17 }
 0x1ed   : > { %3686 = vmatpush3.bf16.msra.mxu0 %v4263_v8  ;;  %3708 = vmatpush3.bf16.msra.mxu1 %v4264_v9 }
 0x1ee   : > { %3687 = vmatprep.subr.bf16.mxu0 %v4265_v10  ;;  %3709 = vmatprep.subr.bf16.mxu1 %v4266_v11 }
 0x1f1   : > { %3688 = vmatpush3.bf16.msra.mxu0 %v4267_v12  ;;  %3710 = vmatpush3.bf16.msra.mxu1 %v4268_v13 }
 0x1f2   : > { %3689 = vmatprep.subr.bf16.mxu0 %v4269_v14  ;;  %3711 = vmatprep.subr.bf16.mxu1 %v4270_v19 }
 0x1f5   : > { %3690 = vmatpush3.bf16.msra.mxu0 %v4271_v20  ;;  %3712 = vmatpush3.bf16.msra.mxu1 %v4272_v23 }
 0x1f6   : > { %3691 = vmatprep.subr.bf16.mxu0 %v4273_v16  ;;  %3713 = vmatprep.subr.bf16.mxu1 %v4274_v24 }
 0x1f9   : > { %3692 = vmatpush3.bf16.msra.mxu0 %v4275_v25  ;;  %3714 = vmatpush3.bf16.msra.mxu1 %v4276_v26 }
 0x2af   : > { %v2555_v35 = vpop.f32.mrb[0].mxu0  ;;  %v2719_v22 = vpop.f32.mrb[0].mxu1 }
 0x2b0   : > { %v3721_v39 = vadd.f32 %v2555_v35, %v1073_v29  ;;  %v3723_v38 = vadd.f32 %v2719_v22, %v1081_v30  ;;  %v2557_v43 = vpop.f32.mrb[1].mxu0  ;;  %v2721_v45 = vpop.f32.mrb[1].mxu1 }
 0x2b1   : > { %v3722_v46 = vadd.f32 %v2557_v43, %v1077_v31  ;;  %v3724_v48 = vadd.f32 %v2721_v45, %v1085_v32  ;;  %v2559_v44 = vpop.f32.mrb[2].mxu0  ;;  %v2723_v49 = vpop.f32.mrb[2].mxu1 }
 0x2b2   : > { %v2732_v47 = vmul.f32 %v3721_v39, %v2728_v33  ;;  %v2734_v2 = vmul.f32 %v3723_v38, %v2730_v34  ;;  %v2560_v40 = vpop.f32.mrb[3].mxu0  ;;  %v2724_v15 = vpop.f32.mrb[3].mxu1 }
 0x2b3   : > { %v2733_v1 = vmul.f32 %v3722_v46, %v2729_v36  ;;  %v2735_v51 = vmul.f32 %v3724_v48, %v2731_v37 }
 0x2b4   : > { %v2736_v52 = vmax.f32 %v2732_v47, 0.0  ;;  %v2738_v53 = vmax.f32 %v2734_v2, 0.0 }
 0x2b5   : > { %v2737_v54 = vmax.f32 %v2733_v1, 0.0  ;;  %v2739_v55 = vmax.f32 %v2735_v51, 0.0 }
 0x2b6   : > { %2740 = vst [vmem:[%s482_s10] sm:$0xff] %v2736_v52  ;;  %2742 = vst [vmem:[%s482_s10 + $0x10] sm:$0xff] %v2738_v53  ;;  %v2744_v57 = vpack.c.bf16 %v2736_v52, %v2736_v52  ;;  %v2746_v58 = vpack.c.bf16 %v2738_v53, %v2738_v53 }
 0x2b7   : > { %2741 = vst [vmem:[%s482_s10 + $0x8] sm:$0xff] %v2737_v54  ;;  %2743 = vst [vmem:[%s482_s10 + $0x18] sm:$0xff] %v2739_v55  ;;  %v2745_v7 = vpack.c.bf16 %v2737_v54, %v2737_v54  ;;  %v2747_v56 = vpack.c.bf16 %v2739_v55, %v2739_v55 }
 0x2b9   : > { %3036 = vmatprep.mubr.bf16.mxu0 %v2745_v7  ;;  %3076 = vmatprep.mubr.bf16.mxu1 %v2747_v56 }
 0x2ba   : > { %3037 = vmatmul.mubr.bf16.vlgmr.msra.gmra.mrb[4].mxu0 %v2744_v57  ;;  %3077 = vmatmul.mubr.bf16.vlgmr.msra.gmra.mrb[4].mxu1 %v2746_v58 }
 0x2bb   : > { %4482 = shalt.err (!%p4479_p7)
}
 0x2bc   : > { %s4483_s19 = scalar_lea.hbm %s5346_s1, 512  ;;  %s4487_s22 = scalar_lea.hbm %s5500_s18, 1024 }
 0x2bd   : > { %p4484_p6 = scmp.ne.s32.totalorder %s5346_s1, %s4483_s19  ;;  %p4488_p2 = scmp.lt.u32.totalorder %s5346_s1, %s5500_s18 }
 0x2be   : > { %p4489_p12 = scmp.lt.u32.totalorder %s4487_s22, %s4483_s19  ;;  %p4491_p10 = scmp.lt.u32.totalorder %s4483_s19, %s5346_s1 }
 0x2bf   : > { %p4485_p11 = pnand %p4484_p6, %p5501_p9 }
 0x2c0   : > { %p4490_p4 = por %p4489_p12, %p4488_p2 }
 0x2c1   : > { %p4486_p5 = pneg %p4485_p11 }
 0x2c2   : > { %p4492_p0 = por %p4491_p10, %p4490_p4 }
 0x2c4   : > { %p4493_p1 = pnand %p4492_p0, %p4486_p5 }
 0x2c6   : > { %4496 = shalt.err (!%p4493_p1)
}
 0x2c7   : > { %3767 = dma.vmem_to_hbm [thread:$0]  (%p5501_p9), %s3115_s30, 512, %s5346_s1, %s3094_s23   ;;  %v3089_v21 = vld [vmem:[%s5338_s8] sm:$0xff] }
 0x2c8   : > { %s3658_s27 = sshll.u32 %s5497_s15, 7  ;;  %s3127_s17 = sshll.u32 %s5338_s8, 4  ;;  %s5374_s17 = int_to_ptr.vmem [resolvable:$true] %s3127_s17 }
 0x2c9   : > { %s5502_s16 = sld [smem:[#allocation35_spill]]  ;;  %s3099_s24 = scalar_lea.sflag [#allocation16], %s4925_s26 }
 0x2ca   : > { %s4497_s21 = scalar_lea.vmem %s5374_s17, 128  ;;  %s4608_s15 = smov [#allocation15]  }
 0x2cb   : > { %p4498_p3 = scmp.ne.s32.totalorder %s5374_s17, %s4497_s21  ;;  %s4501_s1 = sshll.u32 %s4608_s15, 4  ;;  %s4502_s1 = int_to_ptr.vmem [resolvable:$false] %s4501_s1 }
 0x2cc   : > { %s4503_s23 = scalar_lea.vmem %s4502_s1, 256  ;;  %p4504_p7 = scmp.lt.s32.totalorder %s5374_s17, %s4502_s1 }
 0x2cd   : > { %p4499_p8 = pnand %p4498_p3, %p5501_p9  ;;  %p4505_p6 = scmp.lt.s32.totalorder %s4503_s23, %s4497_s21 }
 0x2cf   : > { %s5372_s30 = scalar_lea.hbm %s5502_s16, %s3658_s27  ;;  %p4500_p13 = pneg %p4499_p8 }
 0x2d0   : > { %p4506_p11 = por %p4505_p6, %p4504_p7 }
 0x2d2   : > { %p4507_p5 = pnand %p4506_p11, %p4500_p13 }
 0x38d   : > { %v3693_v41 = vpop.f32.mrb[4].mxu0  ;;  %v3715_v60 = vpop.f32.mrb[4].mxu1 }
 0x38e   : > { %v3694_v61 = vpop.f32.mrb[5].mxu0  ;;  %v3716_v62 = vpop.f32.mrb[5].mxu1 }
 0x38f   : > { %v3695_v63 = vadd.f32 %v3694_v61, %v3693_v41  ;;  %v3717_v0 = vadd.f32 %v3716_v62, %v3715_v60  ;;  %v3696_v50 = vpop.f32.mrb[6].mxu0  ;;  %v3718_v42 = vpop.f32.mrb[6].mxu1 }
 0x390   : > { %v3697_v3 = vpop.f32.mrb[7].mxu0  ;;  %v3719_v4 = vpop.f32.mrb[7].mxu1 }
 0x391   : > { %v3079_v5 = vadd.f32 %v3717_v0, %v3695_v63 }
 0x393   : > { %v3090_v6 = vadd.f32 %v3089_v21, %v3079_v5 }
 0x395   : > { %3092 = vst.msk [vmem:[%s5338_s8] sm:$0xff] %vm3087_vm0, %v3090_v6 }
 0x396   : > { %4510 = shalt.err (!%p4507_p5)
}
 0x397   : > { %s4511_s26 = scalar_lea.hbm %s5372_s30, 128  ;;  %s4515_s3 = scalar_lea.hbm %s5502_s16, 256 }
 0x398   : > { %p4512_p2 = scmp.ne.s32.totalorder %s5372_s30, %s4511_s26  ;;  %p4516_p10 = scmp.lt.u32.totalorder %s5372_s30, %s5502_s16 }
 0x399   : > { %p4517_p0 = scmp.lt.u32.totalorder %s4515_s3, %s4511_s26  ;;  %p4519_p3 = scmp.lt.u32.totalorder %s4511_s26, %s5372_s30 }
 0x39a   : > { %p4513_p12 = pnand %p4512_p2, %p5501_p9 }
 0x39b   : > { %p4518_p1 = por %p4517_p0, %p4516_p10 }
 0x39c   : > { %p4514_p4 = pneg %p4513_p12 }
 0x39d   : > { %p4520_p8 = por %p4519_p3, %p4518_p1 }
 0x39f   : > { %p4521_p13 = pnand %p4520_p8, %p4514_p4 }
 0x3a1   : > { %4524 = shalt.err (!%p4521_p13)
}
 0x3a2   : > { %3768 = dma.vmem_to_hbm [thread:$0]  (%p5501_p9), %s5374_s17, 128, %s5372_s30, %s3099_s24  }
 0x3a3 PF: > { %s5503_s19 = sld [smem:[#allocation23_spill]]  ;;  %s5504_s6 = sld [smem:[#allocation28_spill]] }
 0x3a4   : > { %s5505_s29 = sld [smem:[#allocation26_spill]] }
 0x3a9   : > { %s3139_s22 = sand.u32 1, %s5503_s19   ;;  %p5506_p7 = scmp.ne.s32.totalorder %s5504_s6, 0 }
 0x3aa   : > { %p5507_p6 = scmp.ge.s32.totalorder %s5505_s29, 2  ;;  %s3140_s14 = scalar_lea.sflag [#allocation5], %s3139_s22 }
 0x3ac   : > { %p3792_p11 = pnand %p5507_p6, %p5506_p7 }
 0x3ae   : > { %4566 = dma.done.wait (!%p3792_p11), %s3140_s14, 512  }
 0x3af   : > { %4568 = vsyncadd (!%p3792_p11), %s3140_s14, 4294966784  ;;  %s3149_s25 = scalar_lea.sflag [#allocation16], %s3139_s22 }
 0x3b0   : > { %4570 = dma.done.wait (!%p3792_p11), %s3149_s25, 128  }
 0x3b1   : > { %4572 = vsyncadd (!%p3792_p11), %s3149_s25, 4294967168  ;;  %s33_s10 = sadd.s32 1, %s5505_s29   ;;  %s5508_s12 = sld [smem:[#allocation24_spill]] }
 0x3b2   : > { %p30_p5 = scmp.ge.s32.totalorder %s33_s10, 4   ;;  %s5509_s29 = sld [smem:[#allocation30_spill]] }
 0x3b3   : > { %s5510_s17 = sld [smem:[#allocation29_spill]]  ;;  %s5511_s27 = smov %s4579_s28 }
 0x3b4   : > { %s5513_s30 = smov %s4591_s9  ;;  %32 = sbr.rel (!%p30_p5) target bundleno = 18 (0x12), region = 158 }
 0x3b7   : > { %s5512_s28 = smov %s5508_s12 }
 0x3b9   : > { %s5514_s9 = smov %s5510_s17 }
 0x3bb   :  { %3154 = vsyncpa [#allocation4], 1 }
 0x3bc   :  { %3156 = vsyncpa [#allocation4 + $0x1], 1 }
 0x3bd   :  { %3157 = vsyncpa [#allocation7], 1 }
 0x3be   :  { %3158 = vsyncpa [#allocation10], 1 }
 0x3bf   :  { %3160 = vsyncpa [#allocation10 + $0x1], 1 }
 0x3c0   :  { %3161 = vsyncpa [#allocation13], 1 }
 0x3c1   :  { %3163 = vsyncpa [#allocation13 + $0x1], 1 }
 0x3c2   :  { %3164 = vsyncpa [#allocation5], 1 }
 0x3c3   :  { %3166 = vsyncpa [#allocation5 + $0x1], 1 }
 0x3c4   :  { %3167 = vsyncpa [#allocation16], 1 }
 0x3c5   :  { %3169 = vsyncpa [#allocation16 + $0x1], 1 }

</bundles_post_ra>
